<compile_context>
chip_gen: v6e
topology: v6e:2x2x1
jax: 0.10.0
libtpu: 0.0.40
codegen_flags: <defaults>
</compile_context>

<pallas_src>
import functools

import numpy as np
import jax
import jax.numpy as jnp
from jax import lax
from jax.experimental import pallas as pl
from jax.experimental.pallas import tpu as pltpu

NUM_GROUPS = 32
EPS = 1e-6


def _choose_tile(n, target):
    """Largest divisor of n that is <= target and a multiple of 16 (else n)."""
    if n <= target:
        return n
    for t in range(target, 15, -1):
        if n % t == 0 and t % 16 == 0:
            return t
    return n


def _vmem_limit(nbytes):
    lo, hi = 16 * 1024 * 1024, 48 * 1024 * 1024   # stay under v7x 64 MiB physical
    return int(min(max(2 * nbytes, lo), hi))


# ----------------------- kernel 1: GroupNorm affine + fused QKV ---------------

def _qkv_kernel(C, x_ref, scale_ref, shift_ref, w_ref, b_ref, q_ref, k_ref, v_ref):
    # x_ref: (1, Tm, C) f32; scale/shift: (1, 1, C) f32; w: (C, 3C) bf16; b: (1, 3C) f32
    xn = (x_ref[0] * scale_ref[0] + shift_ref[0]).astype(jnp.bfloat16)        # (Tm, C)
    # one fused MXU pass for Q|K|V (bf16 operands, f32 accumulation)
    qkv = jnp.dot(xn, w_ref[...], preferred_element_type=jnp.float32) + b_ref[...]
    q_ref[0] = qkv[:, :C].astype(jnp.bfloat16)        # already scaled by C**-0.5
    k_ref[0] = qkv[:, C:2 * C].astype(jnp.bfloat16)
    v_ref[0] = qkv[:, 2 * C:].astype(jnp.bfloat16)


# ------------- kernel 2: flash attention + output projection + residual -------

def _flash_kernel(q_ref, k_ref, v_ref, resid_ref, wo_ref, bo_ref, out_ref,
                  m_sc, l_sc, acc_sc):
    ki = pl.program_id(2)

    @pl.when(ki == 0)
    def _init():
        m_sc[...] = jnp.full(m_sc.shape, -jnp.inf, jnp.float32)
        l_sc[...] = jnp.zeros(l_sc.shape, jnp.float32)
        acc_sc[...] = jnp.zeros(acc_sc.shape, jnp.float32)

    q = q_ref[0]                                   # (Tq, C) bf16 (pre-scaled)
    k = k_ref[0]                                   # (Tk, C) bf16
    v = v_ref[0]                                   # (Tk, C) bf16

    # (Tq, Tk) tile of the energy matrix only — the full (N, N) never exists.
    s = lax.dot_general(q, k, (((1,), (1,)), ((), ())),
                        preferred_element_type=jnp.float32)

    m_prev = m_sc[...]
    m_new = jnp.maximum(m_prev, jnp.max(s, axis=-1, keepdims=True))
    alpha = jnp.exp(m_prev - m_new)                # rescale running stats (f32)
    p = jnp.exp(s - m_new)                         # (Tq, Tk) f32
    l_sc[...] = alpha * l_sc[...] + jnp.sum(p, axis=-1, keepdims=True)
    acc_sc[...] = alpha * acc_sc[...] + jnp.dot(
        p.astype(jnp.bfloat16), v, preferred_element_type=jnp.float32)
    m_sc[...] = m_new

    @pl.when(ki == pl.num_programs(2) - 1)
    def _finalize():
        inv_l = pl.reciprocal(l_sc[...], approx=True)          # EUP, not VALU div
        ctx = (acc_sc[...] * inv_l).astype(jnp.bfloat16)       # (Tq, C)
        out = jnp.dot(ctx, wo_ref[...],
                      preferred_element_type=jnp.float32) + bo_ref[...]
        out_ref[0] = out + resid_ref[0]


# ----------------------------------- wrapper ----------------------------------

def self_attention_pallas(x, params, *, row_tile=512, q_tile=512, kv_tile=512):
    """x: (B, C, H, W) float32, NCHW like the PyTorch module."""
    B, C, H, W = x.shape
    N = H * W
    G = NUM_GROUPS
    assert C % G == 0, "GroupNorm(32, C) requires C % 32 == 0"
    Cg = C // G
    scale = float(C) ** (-0.5)

    Tm = _choose_tile(N, row_tile)
    Tq = _choose_tile(N, q_tile)
    Tk = _choose_tile(N, kv_tile)

    # ---- glue (plain JAX): layouts + GroupNorm statistics (tiny reduction) ----
    x_seq = jnp.transpose(x.reshape(B, C, N), (0, 2, 1))   # (B, N, C) norm/proj path
    resid = x.reshape(B, N, C)                             # PyTorch .view quirk (free)

    xg = x.reshape(B, G, Cg * N)
    mean_g = jnp.mean(xg, axis=-1)                         # (B, G)
    var_g = jnp.var(xg, axis=-1)                           # biased, like torch GN
    inv_g = lax.rsqrt(var_g + EPS)
    scale_c = jnp.repeat(inv_g, Cg, axis=1) * params["gamma"][None, :]        # (B, C)
    shift_c = params["beta"][None, :] - jnp.repeat(mean_g, Cg, axis=1) * scale_c
    scale_bc = scale_c[:, None, :].astype(jnp.float32)     # (B, 1, C)
    shift_bc = shift_c[:, None, :].astype(jnp.float32)

    # ---- fused QKV weight; 1/sqrt(C) folded into Wq/bq; bf16 MXU operands ----
    w_qkv = jnp.concatenate(
        [params["Wq"].T * scale, params["Wk"].T, params["Wv"].T], axis=1
    ).astype(jnp.bfloat16)                                 # (C, 3C)
    b_qkv = jnp.concatenate(
        [params["bq"] * scale, params["bk"], params["bv"]]
    ).reshape(1, 3 * C).astype(jnp.float32)
    wo_t = params["Wo"].T.astype(jnp.bfloat16)             # (C, C)
    bo = params["bo"].reshape(1, C).astype(jnp.float32)

    # ------------- kernel 1: normalize + fused QKV projection ------------------
    qkv_bytes = (2 * Tm * C * 4            # x block (double-buffered)
                 + 3 * 2 * Tm * C * 2      # q/k/v output blocks
                 + 2 * C * 3 * C * 2       # fused weight
                 + Tm * 3 * C * 4)         # f32 qkv intermediate
    row_spec = lambda: pl.BlockSpec((1, Tm, C), lambda b, mi: (b, mi, 0))
    q_out, k_out, v_out = pl.pallas_call(
        functools.partial(_qkv_kernel, C),
        out_shape=(jax.ShapeDtypeStruct((B, N, C), jnp.bfloat16),
                   jax.ShapeDtypeStruct((B, N, C), jnp.bfloat16),
                   jax.ShapeDtypeStruct((B, N, C), jnp.bfloat16)),
        grid_spec=pltpu.PrefetchScalarGridSpec(
            num_scalar_prefetch=0,
            grid=(B, N // Tm),
            in_specs=[
                row_spec(),                                         # x_seq
                pl.BlockSpec((1, 1, C), lambda b, mi: (b, 0, 0)),   # GN scale
                pl.BlockSpec((1, 1, C), lambda b, mi: (b, 0, 0)),   # GN shift
                pl.BlockSpec((C, 3 * C), lambda b, mi: (0, 0)),     # W_qkv (bf16)
                pl.BlockSpec((1, 3 * C), lambda b, mi: (0, 0)),     # b_qkv
            ],
            out_specs=[row_spec(), row_spec(), row_spec()],
        ),
        compiler_params=pltpu.CompilerParams(
            dimension_semantics=("parallel", "parallel"),
            vmem_limit_bytes=_vmem_limit(qkv_bytes)),
    )(x_seq, scale_bc, shift_bc, w_qkv, b_qkv)

    # ------------- kernel 2: flash attention + out-proj + residual -------------
    flash_bytes = (2 * Tq * C * 2 + 2 * 2 * Tk * C * 2    # q, k, v blocks
                   + 2 * Tq * C * 4 + 2 * Tq * C * 4      # resid + out blocks
                   + 2 * C * C * 2                        # Wo
                   + Tq * C * 4 + 3 * Tq * Tk * 4)        # acc scratch + s/p tiles
    out_seq = pl.pallas_call(
        _flash_kernel,
        out_shape=jax.ShapeDtypeStruct((B, N, C), jnp.float32),
        grid_spec=pltpu.PrefetchScalarGridSpec(
            num_scalar_prefetch=0,
            grid=(B, N // Tq, N // Tk),
            in_specs=[
                pl.BlockSpec((1, Tq, C), lambda b, qi, ki: (b, qi, 0)),   # Q
                pl.BlockSpec((1, Tk, C), lambda b, qi, ki: (b, ki, 0)),   # K
                pl.BlockSpec((1, Tk, C), lambda b, qi, ki: (b, ki, 0)),   # V
                pl.BlockSpec((1, Tq, C), lambda b, qi, ki: (b, qi, 0)),   # residual
                pl.BlockSpec((C, C), lambda b, qi, ki: (0, 0)),           # Wo^T (bf16)
                pl.BlockSpec((1, C), lambda b, qi, ki: (0, 0)),           # bo
            ],
            out_specs=pl.BlockSpec((1, Tq, C), lambda b, qi, ki: (b, qi, 0)),
            scratch_shapes=[
                pltpu.VMEM((Tq, 1), jnp.float32),   # running max m
                pltpu.VMEM((Tq, 1), jnp.float32),   # running denom l
                pltpu.VMEM((Tq, C), jnp.float32),   # output accumulator
            ],
        ),
        compiler_params=pltpu.CompilerParams(
            dimension_semantics=("parallel", "parallel", "arbitrary"),
            vmem_limit_bytes=_vmem_limit(flash_bytes)),
    )(q_out, k_out, v_out, resid, wo_t, bo)

    # glue: raw row-major reshape back to NCHW (mirrors torch .view(B, C, H, W))
    return out_seq.reshape(B, C, H, W)


# --------------------------- pure-JAX reference (f32) --------------------------

def self_attention_reference(x, params):
    """Pure-JAX replica of the PyTorch forward, for verification."""
    B, C, H, W = x.shape
    N = H * W
    G = NUM_GROUPS
    Cg = C // G
    scale = float(C) ** (-0.5)

    xs = x.reshape(B, C, N)                       # (B, C, HW)
    xg = xs.reshape(B, G, Cg * N)
    mean = xg.mean(-1, keepdims=True)
    var = xg.var(-1, keepdims=True)               # biased, like torch GroupNorm
    xn = (xg - mean) / jnp.sqrt(var + EPS)
    xn = xn.reshape(B, C, N) * params["gamma"][None, :, None] + params["beta"][None, :, None]
    xseq = jnp.transpose(xn, (0, 2, 1))           # (B, N, C)

    Q = xseq @ params["Wq"].T + params["bq"]
    K = xseq @ params["Wk"].T + params["bk"]
    V = xseq @ params["Wv"].T + params["bv"]
    energy = jnp.einsum("bnc,bmc->bnm", Q, K) * scale
    attn = jax.nn.softmax(energy, axis=-1)
    ctx = jnp.einsum("bnm,bmc->bnc", attn, V)
    out = ctx @ params["Wo"].T + params["bo"]
    out = out.reshape(B, C, H, W) + x             # same quirky view as PyTorch
    return out


def make_params(key, C):
    ks = jax.random.split(key, 10)
    std = 0.05
    return {
        "Wq": jax.random.normal(ks[0], (C, C), jnp.float32) * std,
        "bq": jax.random.normal(ks[1], (C,), jnp.float32) * std,
        "Wk": jax.random.normal(ks[2], (C, C), jnp.float32) * std,
        "bk": jax.random.normal(ks[3], (C,), jnp.float32) * std,
        "Wv": jax.random.normal(ks[4], (C, C), jnp.float32) * std,
        "bv": jax.random.normal(ks[5], (C,), jnp.float32) * std,
        "Wo": jax.random.normal(ks[6], (C, C), jnp.float32) * std,
        "bo": jax.random.normal(ks[7], (C,), jnp.float32) * std,
        "gamma": 1.0 + 0.1 * jax.random.normal(ks[8], (C,), jnp.float32),
        "beta": 0.1 * jax.random.normal(ks[9], (C,), jnp.float32),
    }


if __name__ == "__main__":
    key = jax.random.PRNGKey(0)
    kx, kp = jax.random.split(key)

    B, C, H, W = 2, 64, 8, 8          # C must be divisible by 32 (GroupNorm(32, C))
    x = jax.random.normal(kx, (B, C, H, W), jnp.float32)
    params = make_params(kp, C)

    fwd = jax.jit(self_attention_pallas)
    out = jax.block_until_ready(fwd(x, params))
    ref = jax.block_until_ready(self_attention_reference(x, params))

    # bf16 MXU operands (f32 accumulation) -> compare against the f32 reference
    # with a correspondingly loosened tolerance.
    np.testing.assert_allclose(np.asarray(out), np.asarray(ref), rtol=3e-2, atol=3e-2)
    print("KERNEL_OK")
</pallas_src>

<mosaic_0001>
module attributes {stable_mosaic.version = 11 : i64} {
  func.func @_flash_kernel(%arg0: i32, %arg1: i32, %arg2: i32, %arg3: memref<1x64x64xbf16, #tpu.memory_space<vmem>>, %arg4: memref<1x64x64xbf16, #tpu.memory_space<vmem>>, %arg5: memref<1x64x64xbf16, #tpu.memory_space<vmem>>, %arg6: memref<1x64x64xf32, #tpu.memory_space<vmem>>, %arg7: memref<64x64xbf16, #tpu.memory_space<vmem>>, %arg8: memref<1x64xf32, #tpu.memory_space<vmem>>, %arg9: memref<1x64x64xf32, #tpu.memory_space<vmem>>, %arg10: memref<64x1xf32, #tpu.memory_space<vmem>>, %arg11: memref<64x1xf32, #tpu.memory_space<vmem>>, %arg12: memref<64x64xf32, #tpu.memory_space<vmem>>) attributes {dimension_semantics = [#tpu.dimension_semantics<parallel>, #tpu.dimension_semantics<parallel>, #tpu.dimension_semantics<arbitrary>], iteration_bounds = array<i64: 2, 1, 1>, scalar_prefetch = 0 : i64, scratch_operands = 3 : i64, tpu.core_type = #tpu.core_type<tc>, window_params = [{transform_indices = @transform_0, window_bounds = array<i64: 1, 64, 64>}, {transform_indices = @transform_1, window_bounds = array<i64: 1, 64, 64>}, {transform_indices = @transform_2, window_bounds = array<i64: 1, 64, 64>}, {transform_indices = @transform_3, window_bounds = array<i64: 1, 64, 64>}, {pipeline_mode = #tpu.pipeline_mode<synchronous>, transform_indices = @transform_4, window_bounds = array<i64: 64, 64>}, {pipeline_mode = #tpu.pipeline_mode<synchronous>, transform_indices = @transform_5, window_bounds = array<i64: 1, 64>}, {transform_indices = @transform_6, window_bounds = array<i64: 1, 64, 64>}]} {
    %c0_i32 = arith.constant 0 : i32
    %0 = arith.cmpi eq, %arg2, %c0_i32 : i32
    %1 = arith.extui %0 : i1 to i32
    %c0_i32_0 = arith.constant 0 : i32
    %2 = arith.cmpi ne, %1, %c0_i32_0 : i32
    scf.if %2 {
      %cst_26 = arith.constant 0xFF800000 : f32
      %36 = vector.broadcast %cst_26 : f32 to vector<64x1xf32>
      %c0_27 = arith.constant 0 : index
      %c0_28 = arith.constant 0 : index
      %37 = vector.load %arg10[%c0_27, %c0_28] : memref<64x1xf32, #tpu.memory_space<vmem>>, vector<64x1xf32>
      tpu.vector_store %arg10[%c0_27, %c0_28], %36 {strides = array<i32>} : memref<64x1xf32, #tpu.memory_space<vmem>>, vector<64x1xf32>,
      %cst_29 = arith.constant 0.000000e+00 : f32
      %38 = vector.broadcast %cst_29 : f32 to vector<64x1xf32>
      %c0_30 = arith.constant 0 : index
      %c0_31 = arith.constant 0 : index
      %39 = vector.load %arg11[%c0_30, %c0_31] : memref<64x1xf32, #tpu.memory_space<vmem>>, vector<64x1xf32>
      tpu.vector_store %arg11[%c0_30, %c0_31], %38 {strides = array<i32>} : memref<64x1xf32, #tpu.memory_space<vmem>>, vector<64x1xf32>,
      %cst_32 = arith.constant 0.000000e+00 : f32
      %40 = vector.broadcast %cst_32 : f32 to vector<64x64xf32>
      %c0_33 = arith.constant 0 : index
      %c0_34 = arith.constant 0 : index
      %41 = vector.load %arg12[%c0_33, %c0_34] : memref<64x64xf32, #tpu.memory_space<vmem>>, vector<64x64xf32>
      tpu.vector_store %arg12[%c0_33, %c0_34], %40 {strides = array<i32>} : memref<64x64xf32, #tpu.memory_space<vmem>>, vector<64x64xf32>,
    } else {
    }
    %c0 = arith.constant 0 : index
    %c0_1 = arith.constant 0 : index
    %c0_2 = arith.constant 0 : index
    %3 = vector.load %arg3[%c0, %c0_1, %c0_2] : memref<1x64x64xbf16, #tpu.memory_space<vmem>>, vector<1x64x64xbf16>
    %4 = vector.shape_cast %3 : vector<1x64x64xbf16> to vector<64x64xbf16>
    %c0_3 = arith.constant 0 : index
    %c0_4 = arith.constant 0 : index
    %c0_5 = arith.constant 0 : index
    %5 = vector.load %arg4[%c0_3, %c0_4, %c0_5] : memref<1x64x64xbf16, #tpu.memory_space<vmem>>, vector<1x64x64xbf16>
    %6 = vector.shape_cast %5 : vector<1x64x64xbf16> to vector<64x64xbf16>
    %c0_6 = arith.constant 0 : index
    %c0_7 = arith.constant 0 : index
    %c0_8 = arith.constant 0 : index
    %7 = vector.load %arg5[%c0_6, %c0_7, %c0_8] : memref<1x64x64xbf16, #tpu.memory_space<vmem>>, vector<1x64x64xbf16>
    %8 = vector.shape_cast %7 : vector<1x64x64xbf16> to vector<64x64xbf16>
    %cst = arith.constant dense<0.000000e+00> : vector<64x64xf32>
    %9 = tpu.matmul %4, %6, %cst {dimension_numbers = #tpu.dot_dimension_numbers<[1], [1], [0], [0], [0, 0, 1, 0], [], []>} : vector<64x64xbf16>, vector<64x64xbf16>, vector<64x64xf32> -> vector<64x64xf32>
    %c0_9 = arith.constant 0 : index
    %c0_10 = arith.constant 0 : index
    %10 = vector.load %arg10[%c0_9, %c0_10] : memref<64x1xf32, #tpu.memory_space<vmem>>, vector<64x1xf32>
    %cst_11 = arith.constant dense<0xFF800000> : vector<64xf32>
    %11 = vector.multi_reduction <maximumf>, %9, %cst_11 [1] : vector<64x64xf32> to vector<64xf32>
    %12 = vector.shape_cast %11 : vector<64xf32> to vector<64x1xf32>
    %13 = arith.maximumf %10, %12 : vector<64x1xf32>
    %14 = arith.subf %10, %13 : vector<64x1xf32>
    %15 = math.exp %14 : vector<64x1xf32>
    %16 = vector.broadcast %13 : vector<64x1xf32> to vector<64x64xf32>
    %17 = arith.subf %9, %16 : vector<64x64xf32>
    %18 = math.exp %17 : vector<64x64xf32>
    %c0_12 = arith.constant 0 : index
    %c0_13 = arith.constant 0 : index
    %19 = vector.load %arg11[%c0_12, %c0_13] : memref<64x1xf32, #tpu.memory_space<vmem>>, vector<64x1xf32>
    %20 = arith.mulf %15, %19 : vector<64x1xf32>
    %cst_14 = arith.constant dense<0.000000e+00> : vector<64xf32>
    %21 = vector.multi_reduction <add>, %18, %cst_14 [1] : vector<64x64xf32> to vector<64xf32>
    %22 = vector.shape_cast %21 : vector<64xf32> to vector<64x1xf32>
    %23 = arith.addf %20, %22 : vector<64x1xf32>
    %c0_15 = arith.constant 0 : index
    %c0_16 = arith.constant 0 : index
    %24 = vector.load %arg11[%c0_15, %c0_16] : memref<64x1xf32, #tpu.memory_space<vmem>>, vector<64x1xf32>
    tpu.vector_store %arg11[%c0_15, %c0_16], %23 {strides = array<i32>} : memref<64x1xf32, #tpu.memory_space<vmem>>, vector<64x1xf32>,
    %c0_17 = arith.constant 0 : index
    %c0_18 = arith.constant 0 : index
    %25 = vector.load %arg12[%c0_17, %c0_18] : memref<64x64xf32, #tpu.memory_space<vmem>>, vector<64x64xf32>
    %26 = vector.broadcast %15 : vector<64x1xf32> to vector<64x64xf32>
    %27 = arith.mulf %26, %25 : vector<64x64xf32>
    %28 = arith.truncf %18 : vector<64x64xf32> to vector<64x64xbf16>
    %cst_19 = arith.constant dense<0.000000e+00> : vector<64x64xf32>
    %29 = tpu.matmul %28, %8, %cst_19 {dimension_numbers = #tpu.dot_dimension_numbers<[1], [0], [0], [1], [0, 0, 1, 1], [], []>} : vector<64x64xbf16>, vector<64x64xbf16>, vector<64x64xf32> -> vector<64x64xf32>
    %30 = arith.addf %27, %29 : vector<64x64xf32>
    %c0_20 = arith.constant 0 : index
    %c0_21 = arith.constant 0 : index
    %31 = vector.load %arg12[%c0_20, %c0_21] : memref<64x64xf32, #tpu.memory_space<vmem>>, vector<64x64xf32>
    tpu.vector_store %arg12[%c0_20, %c0_21], %30 {strides = array<i32>} : memref<64x64xf32, #tpu.memory_space<vmem>>, vector<64x64xf32>,
    %c0_22 = arith.constant 0 : index
    %c0_23 = arith.constant 0 : index
    %32 = vector.load %arg10[%c0_22, %c0_23] : memref<64x1xf32, #tpu.memory_space<vmem>>, vector<64x1xf32>
    tpu.vector_store %arg10[%c0_22, %c0_23], %13 {strides = array<i32>} : memref<64x1xf32, #tpu.memory_space<vmem>>, vector<64x1xf32>,
    %c0_i32_24 = arith.constant 0 : i32
    %33 = arith.cmpi eq, %arg2, %c0_i32_24 : i32
    %34 = arith.extui %33 : i1 to i32
    %c0_i32_25 = arith.constant 0 : i32
    %35 = arith.cmpi ne, %34, %c0_i32_25 : i32
    scf.if %35 {
      %c0_26 = arith.constant 0 : index
      %c0_27 = arith.constant 0 : index
      %36 = vector.load %arg11[%c0_26, %c0_27] : memref<64x1xf32, #tpu.memory_space<vmem>>, vector<64x1xf32>
      %37 = tpu.reciprocal %36 {approx = true} : vector<64x1xf32> -> vector<64x1xf32>
      %c0_28 = arith.constant 0 : index
      %c0_29 = arith.constant 0 : index
      %38 = vector.load %arg12[%c0_28, %c0_29] : memref<64x64xf32, #tpu.memory_space<vmem>>, vector<64x64xf32>
      %39 = vector.broadcast %37 : vector<64x1xf32> to vector<64x64xf32>
      %40 = arith.mulf %38, %39 : vector<64x64xf32>
      %41 = arith.truncf %40 : vector<64x64xf32> to vector<64x64xbf16>
      %c0_30 = arith.constant 0 : index
      %c0_31 = arith.constant 0 : index
      %42 = vector.load %arg7[%c0_30, %c0_31] : memref<64x64xbf16, #tpu.memory_space<vmem>>, vector<64x64xbf16>
      %cst_32 = arith.constant dense<0.000000e+00> : vector<64x64xf32>
      %43 = tpu.matmul %41, %42, %cst_32 {dimension_numbers = #tpu.dot_dimension_numbers<[1], [0], [0], [1], [0, 0, 1, 1], [], []>} : vector<64x64xbf16>, vector<64x64xbf16>, vector<64x64xf32> -> vector<64x64xf32>
      %c0_33 = arith.constant 0 : index
      %c0_34 = arith.constant 0 : index
      %44 = vector.load %arg8[%c0_33, %c0_34] : memref<1x64xf32, #tpu.memory_space<vmem>>, vector<1x64xf32>
      %45 = vector.broadcast %44 : vector<1x64xf32> to vector<64x64xf32>
      %46 = arith.addf %43, %45 : vector<64x64xf32>
      %c0_35 = arith.constant 0 : index
      %c0_36 = arith.constant 0 : index
      %c0_37 = arith.constant 0 : index
      %47 = vector.load %arg6[%c0_35, %c0_36, %c0_37] : memref<1x64x64xf32, #tpu.memory_space<vmem>>, vector<1x64x64xf32>
      %48 = vector.shape_cast %47 : vector<1x64x64xf32> to vector<64x64xf32>
      %49 = arith.addf %46, %48 : vector<64x64xf32>
      %c0_38 = arith.constant 0 : index
      %c0_39 = arith.constant 0 : index
      %c0_40 = arith.constant 0 : index
      %50 = vector.load %arg9[%c0_38, %c0_39, %c0_40] : memref<1x64x64xf32, #tpu.memory_space<vmem>>, vector<1x64x64xf32>
      %51 = vector.shape_cast %50 : vector<1x64x64xf32> to vector<64x64xf32>
      %52 = vector.shape_cast %49 : vector<64x64xf32> to vector<1x64x64xf32>
      tpu.vector_store %arg9[%c0_38, %c0_39, %c0_40], %52 {strides = array<i32>} : memref<1x64x64xf32, #tpu.memory_space<vmem>>, vector<1x64x64xf32>,
    } else {
    }
    return
  }
  func.func @transform_0(%arg0: i32, %arg1: i32, %arg2: i32) -> (i32, i32, i32) {
    %c0_i32 = arith.constant 0 : i32
    %c0_i32_0 = arith.constant 0 : i32
    return %arg0, %arg1, %c0_i32 : i32, i32, i32
  }
  func.func @transform_1(%arg0: i32, %arg1: i32, %arg2: i32) -> (i32, i32, i32) {
    %c0_i32 = arith.constant 0 : i32
    %c0_i32_0 = arith.constant 0 : i32
    return %arg0, %arg2, %c0_i32 : i32, i32, i32
  }
  func.func @transform_2(%arg0: i32, %arg1: i32, %arg2: i32) -> (i32, i32, i32) {
    %c0_i32 = arith.constant 0 : i32
    %c0_i32_0 = arith.constant 0 : i32
    return %arg0, %arg2, %c0_i32 : i32, i32, i32
  }
  func.func @transform_3(%arg0: i32, %arg1: i32, %arg2: i32) -> (i32, i32, i32) {
    %c0_i32 = arith.constant 0 : i32
    %c0_i32_0 = arith.constant 0 : i32
    return %arg0, %arg1, %c0_i32 : i32, i32, i32
  }
  func.func @transform_4(%arg0: i32, %arg1: i32, %arg2: i32) -> (i32, i32) {
    %c0_i32 = arith.constant 0 : i32
    %c0_i32_0 = arith.constant 0 : i32
    %c0_i32_1 = arith.constant 0 : i32
    return %c0_i32, %c0_i32_0 : i32, i32
  }
  func.func @transform_5(%arg0: i32, %arg1: i32, %arg2: i32) -> (i32, i32) {
    %c0_i32 = arith.constant 0 : i32
    %c0_i32_0 = arith.constant 0 : i32
    %c0_i32_1 = arith.constant 0 : i32
    return %c0_i32, %c0_i32_0 : i32, i32
  }
  func.func @transform_6(%arg0: i32, %arg1: i32, %arg2: i32) -> (i32, i32, i32) {
    %c0_i32 = arith.constant 0 : i32
    %c0_i32_0 = arith.constant 0 : i32
    return %arg0, %arg1, %c0_i32 : i32, i32, i32
  }
}

module attributes {stable_mosaic.version = 11 : i64} {
  func.func @_qkv_kernel(%arg0: i32, %arg1: i32, %arg2: memref<1x64x64xf32, #tpu.memory_space<vmem>>, %arg3: memref<1x1x64xf32, #tpu.memory_space<vmem>>, %arg4: memref<1x1x64xf32, #tpu.memory_space<vmem>>, %arg5: memref<64x192xbf16, #tpu.memory_space<vmem>>, %arg6: memref<1x192xf32, #tpu.memory_space<vmem>>, %arg7: memref<1x64x64xbf16, #tpu.memory_space<vmem>>, %arg8: memref<1x64x64xbf16, #tpu.memory_space<vmem>>, %arg9: memref<1x64x64xbf16, #tpu.memory_space<vmem>>) attributes {dimension_semantics = [#tpu.dimension_semantics<parallel>, #tpu.dimension_semantics<parallel>], iteration_bounds = array<i64: 2, 1>, scalar_prefetch = 0 : i64, scratch_operands = 0 : i64, tpu.core_type = #tpu.core_type<tc>, window_params = [{transform_indices = @transform_0, window_bounds = array<i64: 1, 64, 64>}, {transform_indices = @transform_1, window_bounds = array<i64: 1, 1, 64>}, {transform_indices = @transform_2, window_bounds = array<i64: 1, 1, 64>}, {pipeline_mode = #tpu.pipeline_mode<synchronous>, transform_indices = @transform_3, window_bounds = array<i64: 64, 192>}, {pipeline_mode = #tpu.pipeline_mode<synchronous>, transform_indices = @transform_4, window_bounds = array<i64: 1, 192>}, {transform_indices = @transform_5, window_bounds = array<i64: 1, 64, 64>}, {transform_indices = @transform_6, window_bounds = array<i64: 1, 64, 64>}, {transform_indices = @transform_7, window_bounds = array<i64: 1, 64, 64>}]} {
    %c0 = arith.constant 0 : index
    %c0_0 = arith.constant 0 : index
    %c0_1 = arith.constant 0 : index
    %0 = vector.load %arg2[%c0, %c0_0, %c0_1] : memref<1x64x64xf32, #tpu.memory_space<vmem>>, vector<1x64x64xf32>
    %1 = vector.shape_cast %0 : vector<1x64x64xf32> to vector<64x64xf32>
    %c0_2 = arith.constant 0 : index
    %c0_3 = arith.constant 0 : index
    %c0_4 = arith.constant 0 : index
    %2 = vector.load %arg3[%c0_2, %c0_3, %c0_4] : memref<1x1x64xf32, #tpu.memory_space<vmem>>, vector<1x1x64xf32>
    %3 = vector.shape_cast %2 : vector<1x1x64xf32> to vector<1x64xf32>
    %4 = vector.broadcast %3 : vector<1x64xf32> to vector<64x64xf32>
    %5 = arith.mulf %1, %4 : vector<64x64xf32>
    %c0_5 = arith.constant 0 : index
    %c0_6 = arith.constant 0 : index
    %c0_7 = arith.constant 0 : index
    %6 = vector.load %arg4[%c0_5, %c0_6, %c0_7] : memref<1x1x64xf32, #tpu.memory_space<vmem>>, vector<1x1x64xf32>
    %7 = vector.shape_cast %6 : vector<1x1x64xf32> to vector<1x64xf32>
    %8 = vector.broadcast %7 : vector<1x64xf32> to vector<64x64xf32>
    %9 = arith.addf %5, %8 : vector<64x64xf32>
    %10 = arith.truncf %9 : vector<64x64xf32> to vector<64x64xbf16>
    %c0_8 = arith.constant 0 : index
    %c0_9 = arith.constant 0 : index
    %11 = vector.load %arg5[%c0_8, %c0_9] : memref<64x192xbf16, #tpu.memory_space<vmem>>, vector<64x192xbf16>
    %cst = arith.constant dense<0.000000e+00> : vector<64x192xf32>
    %12 = tpu.matmul %10, %11, %cst {dimension_numbers = #tpu.dot_dimension_numbers<[1], [0], [0], [1], [0, 0, 1, 1], [], []>} : vector<64x64xbf16>, vector<64x192xbf16>, vector<64x192xf32> -> vector<64x192xf32>
    %c0_10 = arith.constant 0 : index
    %c0_11 = arith.constant 0 : index
    %13 = vector.load %arg6[%c0_10, %c0_11] : memref<1x192xf32, #tpu.memory_space<vmem>>, vector<1x192xf32>
    %14 = vector.broadcast %13 : vector<1x192xf32> to vector<64x192xf32>
    %15 = arith.addf %12, %14 : vector<64x192xf32>
    %16 = vector.extract_strided_slice %15 {offsets = [0, 0], sizes = [64, 64], strides = [1, 1]} : vector<64x192xf32> to vector<64x64xf32>
    %17 = arith.truncf %16 : vector<64x64xf32> to vector<64x64xbf16>
    %c0_12 = arith.constant 0 : index
    %c0_13 = arith.constant 0 : index
    %c0_14 = arith.constant 0 : index
    %18 = vector.load %arg7[%c0_12, %c0_13, %c0_14] : memref<1x64x64xbf16, #tpu.memory_space<vmem>>, vector<1x64x64xbf16>
    %19 = vector.shape_cast %18 : vector<1x64x64xbf16> to vector<64x64xbf16>
    %20 = vector.shape_cast %17 : vector<64x64xbf16> to vector<1x64x64xbf16>
    tpu.vector_store %arg7[%c0_12, %c0_13, %c0_14], %20 {strides = array<i32>} : memref<1x64x64xbf16, #tpu.memory_space<vmem>>, vector<1x64x64xbf16>,
    %21 = vector.extract_strided_slice %15 {offsets = [0, 64], sizes = [64, 64], strides = [1, 1]} : vector<64x192xf32> to vector<64x64xf32>
    %22 = arith.truncf %21 : vector<64x64xf32> to vector<64x64xbf16>
    %c0_15 = arith.constant 0 : index
    %c0_16 = arith.constant 0 : index
    %c0_17 = arith.constant 0 : index
    %23 = vector.load %arg8[%c0_15, %c0_16, %c0_17] : memref<1x64x64xbf16, #tpu.memory_space<vmem>>, vector<1x64x64xbf16>
    %24 = vector.shape_cast %23 : vector<1x64x64xbf16> to vector<64x64xbf16>
    %25 = vector.shape_cast %22 : vector<64x64xbf16> to vector<1x64x64xbf16>
    tpu.vector_store %arg8[%c0_15, %c0_16, %c0_17], %25 {strides = array<i32>} : memref<1x64x64xbf16, #tpu.memory_space<vmem>>, vector<1x64x64xbf16>,
    %26 = vector.extract_strided_slice %15 {offsets = [0, 128], sizes = [64, 64], strides = [1, 1]} : vector<64x192xf32> to vector<64x64xf32>
    %27 = arith.truncf %26 : vector<64x64xf32> to vector<64x64xbf16>
    %c0_18 = arith.constant 0 : index
    %c0_19 = arith.constant 0 : index
    %c0_20 = arith.constant 0 : index
    %28 = vector.load %arg9[%c0_18, %c0_19, %c0_20] : memref<1x64x64xbf16, #tpu.memory_space<vmem>>, vector<1x64x64xbf16>
    %29 = vector.shape_cast %28 : vector<1x64x64xbf16> to vector<64x64xbf16>
    %30 = vector.shape_cast %27 : vector<64x64xbf16> to vector<1x64x64xbf16>
    tpu.vector_store %arg9[%c0_18, %c0_19, %c0_20], %30 {strides = array<i32>} : memref<1x64x64xbf16, #tpu.memory_space<vmem>>, vector<1x64x64xbf16>,
    return
  }
  func.func @transform_0(%arg0: i32, %arg1: i32) -> (i32, i32, i32) {
    %c0_i32 = arith.constant 0 : i32
    %c0_i32_0 = arith.constant 0 : i32
    return %arg0, %arg1, %c0_i32 : i32, i32, i32
  }
  func.func @transform_1(%arg0: i32, %arg1: i32) -> (i32, i32, i32) {
    %c0_i32 = arith.constant 0 : i32
    %c0_i32_0 = arith.constant 0 : i32
    %c0_i32_1 = arith.constant 0 : i32
    return %arg0, %c0_i32, %c0_i32_0 : i32, i32, i32
  }
  func.func @transform_2(%arg0: i32, %arg1: i32) -> (i32, i32, i32) {
    %c0_i32 = arith.constant 0 : i32
    %c0_i32_0 = arith.constant 0 : i32
    %c0_i32_1 = arith.constant 0 : i32
    return %arg0, %c0_i32, %c0_i32_0 : i32, i32, i32
  }
  func.func @transform_3(%arg0: i32, %arg1: i32) -> (i32, i32) {
    %c0_i32 = arith.constant 0 : i32
    %c0_i32_0 = arith.constant 0 : i32
    %c0_i32_1 = arith.constant 0 : i32
    return %c0_i32, %c0_i32_0 : i32, i32
  }
  func.func @transform_4(%arg0: i32, %arg1: i32) -> (i32, i32) {
    %c0_i32 = arith.constant 0 : i32
    %c0_i32_0 = arith.constant 0 : i32
    %c0_i32_1 = arith.constant 0 : i32
    return %c0_i32, %c0_i32_0 : i32, i32
  }
  func.func @transform_5(%arg0: i32, %arg1: i32) -> (i32, i32, i32) {
    %c0_i32 = arith.constant 0 : i32
    %c0_i32_0 = arith.constant 0 : i32
    return %arg0, %arg1, %c0_i32 : i32, i32, i32
  }
  func.func @transform_6(%arg0: i32, %arg1: i32) -> (i32, i32, i32) {
    %c0_i32 = arith.constant 0 : i32
    %c0_i32_0 = arith.constant 0 : i32
    return %arg0, %arg1, %c0_i32 : i32, i32, i32
  }
  func.func @transform_7(%arg0: i32, %arg1: i32) -> (i32, i32, i32) {
    %c0_i32 = arith.constant 0 : i32
    %c0_i32_0 = arith.constant 0 : i32
    return %arg0, %arg1, %c0_i32 : i32, i32, i32
  }
}

</mosaic_0001>

<bundles_post_ra>
// kernel: self_attention_pallas.2
= control target key start
LH: loop header
LB: loop body
LE: loop exit
PB: predicated region body
PF: predicated region fallthrough
CT: control target
= control target key end

     0   :  { %s1077_s24 = smov 0   ;;  %s1079_s25 = smov 0   ;;  %s1222_s0 = inlined_call_operand.vmem [shape: f32[2,64,64], index: 0, kind: input, shape index: {}]   ;;  %s1223_s1 = inlined_call_operand.vmem [shape: f32[2,1,64], index: 1, kind: input, shape index: {}]   ;;  %s1224_s2 = inlined_call_operand.vmem [shape: f32[2,1,64], index: 2, kind: input, shape index: {}]   ;;  %s1225_s3 = inlined_call_operand.vmem [shape: bf16[64,192], index: 3, kind: input, shape index: {}]   ;;  %s1226_s4 = inlined_call_operand.vmem [shape: f32[1,192], index: 4, kind: input, shape index: {}]   ;;  %s1227_s5 = inlined_call_operand.vmem [shape: bf16[2,64,64], index: 5, kind: output, shape index: {0}]   ;;  %s1228_s6 = inlined_call_operand.vmem [shape: bf16[2,64,64], index: 6, kind: output, shape index: {1}]   ;;  %s1229_s7 = inlined_call_operand.vmem [shape: bf16[2,64,64], index: 7, kind: output, shape index: {2}]  }
   0x1   :  { %s1081_s26 = smov 0  }
   0x2 LB: > { %s30_s27 = sadd.s32 1, %s1029_s25  ;;  %p904_p0 = scmp.ge.s32.totalorder %s1033_s26, 1  ;;  %s1033_s26 = sphi %s1081_s26, %s18_s26   ;;  %s1029_s25 = sphi %s1079_s25, %s1231_s25   ;;  %s1025_s24 = sphi %s1077_s24, %s1230_s24  }
   0x3   : > { %p32_p1 = scmp.ge.s32.totalorder %s30_s27, 2  ;;  %p283_p2 = scmp.lt.s32.totalorder %s1033_s26, 3 }
   0x5   : > { %s1233_s27 = smov (%p32_p1, %s30_s27), 0  ;;  %p284_p3 = pnand %p904_p0, %p283_p2 }
   0x6   : > { %p348_p4 = scmp.lt.s32.totalorder (!%p284_p3), %s1025_s24, 1  ;;  %s1036_s20 = smov (!%p284_p3), 64  }
   0x7   : > { %287 = sbr.rel (%p284_p3) target bundleno = 360 (0x168), region = 40 }
   0xc   : > { %v999_v0 = vld [vmem:[%s1225_s3 + $0x34] ss:$8 sps:$4 sm:$0xff]   ;;  %v1001_v1 = vld [vmem:[%s1225_s3 + $0x30] ss:$8 sps:$4 sm:$0xff]   ;;  %v1035_v2 = vmov 0   ;;  %s1235_s24 = smov (!%p348_p4, %s1025_s24), 1  ;;  %v446_v39 = vlaneseq }
   0xd   : > { %541 = vmatprep.mubr.bf16.mxu0 %v1035_v2  ;;  %561 = vmatprep.mubr.bf16.mxu1 %v1035_v2  ;;  %v1002_v3 = vld [vmem:[%s1225_s3 + $0x24] ss:$8 sps:$4 sm:$0xff]   ;;  %v1004_v4 = vld [vmem:[%s1225_s3 + $0x20] ss:$8 sps:$4 sm:$0xff]   ;;  %v1005_v5 = vld [vmem:[%s1225_s3 + $0x14] ss:$8 sps:$4 sm:$0xff]   ;;  %s359_s18 = scalar_lea.vmem %s1223_s1, %s1235_s24  ;;  %s362_s28 = scalar_lea.vmem %s1224_s2, %s1235_s24 }
   0xe   : > { %517 = vmatprep.subr.bf16.mxu0 %v999_v0  ;;  %965 = vmatprep.subr.bf16.mxu1 %v999_v0  ;;  %s945_s15 = sshll.u32 %s1235_s24, 6  ;;  %v913_v6 = vld [vmem:[%s359_s18] ss:$0 sm:$0xff]  ;;  %v1007_v7 = vld [vmem:[%s1225_s3 + $0x10] ss:$8 sps:$4 sm:$0xff]   ;;  %vm496_vm0 = vcmask 523264  }
   0xf   : > { %518 = vmatpush1.bf16.msra.mxu0 %v1001_v1  ;;  %969 = vmatpush1.bf16.msra.mxu1 %v1001_v1  ;;  %s355_s21 = scalar_lea.vmem %s1222_s0, %s945_s15  ;;  %v914_v12 = vld [vmem:[%s362_s28] ss:$0 sm:$0xff]  ;;  %v1008_v15 = vld [vmem:[%s1225_s3 + $0x4] ss:$8 sps:$4 sm:$0xff]   ;;  %v447_v40 = vshrl.u32 %v446_v39, 7  ;;  %s1137_s14 = sshll.u32 %s1235_s24, 5 }
  0x10   : > { %519 = vmatprep.subr.bf16.mxu0 %v1002_v3  ;;  %966 = vmatprep.subr.bf16.mxu1 %v1002_v3  ;;  %v394_v8 = vld [vmem:[%s355_s21] sm:$0xff]  ;;  %v395_v9 = vld [vmem:[%s355_s21 + $0x8] sm:$0xff]  ;;  %v396_v22 = vld [vmem:[%s355_s21 + $0x10] sm:$0xff]  ;;  %s1145_s17 = scalar_lea.vmem %s1227_s5, %s1137_s14  ;;  %vm614_vm1 = vcmask 519168   ;;  %s1153_s19 = scalar_lea.vmem %s1229_s7, %s1137_s14 }
  0x11   : > { %v409_v10 = vmul.f32 %v913_v6, %v394_v8  ;;  %v410_v11 = vmul.f32 %v913_v6, %v395_v9  ;;  %v398_v13 = vld [vmem:[%s355_s21 + $0x20] sm:$0xff]  ;;  %v399_v14 = vld [vmem:[%s355_s21 + $0x28] sm:$0xff]  ;;  %v397_v23 = vld [vmem:[%s355_s21 + $0x18] sm:$0xff]  ;;  %v411_v27 = vmul.f32 %v913_v6, %v396_v22  ;;  %v448_v41 = vsub.s32 0, %v447_v40  ;;  %s381_s23 = scalar_lea.vmem %s1228_s6, %s1137_s14 }
  0x12   : > { %v413_v16 = vmul.f32 %v913_v6, %v398_v13  ;;  %v414_v17 = vmul.f32 %v913_v6, %v399_v14  ;;  %v1010_v24 = vld [vmem:[%s1225_s3] ss:$8 sps:$4 sm:$0xff]   ;;  %v400_v25 = vld [vmem:[%s355_s21 + $0x30] sm:$0xff]  ;;  %v401_v26 = vld [vmem:[%s355_s21 + $0x38] sm:$0xff]  ;;  %v412_v28 = vmul.f32 %v913_v6, %v397_v23  ;;  %v452_v43 = vsub.s32 1, %v447_v40 }
  0x13   : > { %520 = vmatpush1.bf16.msra.mxu0 %v1004_v4  ;;  %970 = vmatpush1.bf16.msra.mxu1 %v1004_v4  ;;  %v424_v18 = vadd.f32 %v914_v12, %v409_v10  ;;  %v425_v19 = vadd.f32 %v914_v12, %v410_v11  ;;  %v415_v31 = vmul.f32 %v913_v6, %v400_v25  ;;  %v444_v42 = vld [vmem:[%s1226_s4] sm:$0x3] }
  0x14   : > { %521 = vmatprep.subr.bf16.mxu0 %v1005_v5  ;;  %967 = vmatprep.subr.bf16.mxu1 %v1005_v5  ;;  %v428_v20 = vadd.f32 %v914_v12, %v413_v16  ;;  %v429_v21 = vadd.f32 %v914_v12, %v414_v17  ;;  %v416_v32 = vmul.f32 %v913_v6, %v401_v26 }
  0x15   : > { %v432_v29 = vpack.c.bf16 %v425_v19, %v424_v18  ;;  %v426_v33 = vadd.f32 %v914_v12, %v411_v27  ;;  %v427_v34 = vadd.f32 %v914_v12, %v412_v28  ;;  %v430_v35 = vadd.f32 %v914_v12, %v415_v31 }
  0x16   : > { %v434_v30 = vpack.c.bf16 %v429_v21, %v428_v20  ;;  %v431_v36 = vadd.f32 %v914_v12, %v416_v32  ;;  %v449_v44 = vrot.slane %v444_v42, %v448_v41  ;;  %v1139_v45 = vrot.slane %v444_v42, %v452_v43 }
  0x17   : > { %522 = vmatpush1.bf16.msra.mxu0 %v1007_v7  ;;  %971 = vmatpush1.bf16.msra.mxu1 %v1007_v7  ;;  %v433_v37 = vpack.c.bf16 %v427_v34, %v426_v33 }
  0x18   : > { %523 = vmatprep.subr.bf16.mxu0 %v1008_v15  ;;  %968 = vmatprep.subr.bf16.mxu1 %v1008_v15  ;;  %v435_v38 = vpack.c.bf16 %v431_v36, %v430_v35 }
  0x1b   : > { %524 = vmatpush1.bf16.msra.mxu0 %v1010_v24  ;;  %972 = vmatpush1.bf16.msra.mxu1 %v1010_v24 }
  0x1e   : > { %923 = vmatmul.mubr.msk.bf16.vlgmr.msra.gmra.mxu0 %vm496_vm0, %v432_v29  ;;  %925 = vmatmul.mubr.msk.bf16.vlgmr.msra.gmra.mxu1 %vm496_vm0, %v434_v30 }
  0x1f   : > { %551 = vmatprep.mubr.bf16.mxu0 %v1035_v2  ;;  %571 = vmatprep.mubr.bf16.mxu1 %v1035_v2 }
  0x26   : > { %924 = vmatmul.mubr.msk.bf16.gmra.mxu0 %vm496_vm0, %v433_v37  ;;  %926 = vmatmul.mubr.msk.bf16.gmra.mxu1 %vm496_vm0, %v435_v38 }
  0xde   : > { %v543_v46 = vpop.f32.mrf.mxu0  ;;  %v563_v47 = vpop.f32.mrf.mxu1 }
  0xdf   : > { %v544_v48 = vadd.f32 %v543_v46, %v449_v44  ;;  %v564_v49 = vadd.f32 %v563_v47, %v449_v44 }
  0xe0   : > { %v545_v50 = vpop.f32.mrf.mxu0  ;;  %v565_v51 = vpop.f32.mrf.mxu1 }
  0xe1   : > { %v949_v52 = vpack.c.bf16 %v544_v48, %v544_v48  ;;  %v953_v53 = vpack.c.bf16 %v564_v49, %v564_v49  ;;  %v546_v54 = vadd.f32 %v545_v50, %v1139_v45  ;;  %v566_v55 = vadd.f32 %v565_v51, %v1139_v45 }
  0xe2   : > { %v547_v56 = vpop.f32.mrf.mxu0  ;;  %v567_v57 = vpop.f32.mrf.mxu1 }
  0xe3   : > { %615 = vst.msk [vmem:[%s1145_s17] sm:$0xf] %vm614_vm1, %v949_v52  ;;  %619 = vst.msk [vmem:[%s1145_s17 + $0x10] sm:$0xf] %vm614_vm1, %v953_v53  ;;  %v957_v58 = vpack.c.bf16 %v546_v54, %v546_v54  ;;  %v961_v59 = vpack.c.bf16 %v566_v55, %v566_v55  ;;  %v548_v60 = vadd.f32 %v547_v56, %v449_v44  ;;  %623 = vrot.lane.b32.xlu0 %v949_v52, %s1036_s20 }
  0xe4   : > { %v568_v61 = vadd.f32 %v567_v57, %v449_v44  ;;  %v549_v62 = vpop.f32.mrf.mxu0  ;;  %v569_v63 = vpop.f32.mrf.mxu1 }
  0xe5   : > { %687 = vst.msk [vmem:[%s1153_s19] sm:$0xf] %vm614_vm1, %v957_v58  ;;  %691 = vst.msk [vmem:[%s1153_s19 + $0x10] sm:$0xf] %vm614_vm1, %v961_v59  ;;  %v950_v0 = vpack.c.bf16 %v548_v60, %v548_v60  ;;  %v550_v2 = vadd.f32 %v549_v62, %v1139_v45  ;;  %v570_v3 = vadd.f32 %v569_v63, %v1139_v45 }
  0xe6   : > { %v954_v1 = vpack.c.bf16 %v568_v61, %v568_v61  ;;  %v553_v4 = vpop.f32.mrf.mxu0  ;;  %v573_v5 = vpop.f32.mrf.mxu1 }
  0xe7   : > { %616 = vst.msk [vmem:[%s1145_s17 + $0x4] sm:$0xf] %vm614_vm1, %v950_v0  ;;  %v958_v6 = vpack.c.bf16 %v550_v2, %v550_v2  ;;  %v962_v7 = vpack.c.bf16 %v570_v3, %v570_v3  ;;  %v554_v8 = vadd.f32 %v553_v4, %v449_v44  ;;  %v574_v9 = vadd.f32 %v573_v5, %v449_v44 }
  0xe8   : > { %620 = vst.msk [vmem:[%s1145_s17 + $0x14] sm:$0xf] %vm614_vm1, %v954_v1  ;;  %633 = vrot.lane.b32.xlu1 %v954_v1, %s1036_s20  ;;  %631 = vrot.lane.b32.xlu0 %v953_v53, %s1036_s20  ;;  %v555_v10 = vpop.f32.mrf.mxu0  ;;  %v575_v11 = vpop.f32.mrf.mxu1 }
  0xe9   : > { %688 = vst.msk [vmem:[%s1153_s19 + $0x4] sm:$0xf] %vm614_vm1, %v958_v6  ;;  %692 = vst.msk [vmem:[%s1153_s19 + $0x14] sm:$0xf] %vm614_vm1, %v962_v7  ;;  %v951_v12 = vpack.c.bf16 %v554_v8, %v554_v8  ;;  %v955_v13 = vpack.c.bf16 %v574_v9, %v574_v9  ;;  %v556_v14 = vadd.f32 %v555_v10, %v1139_v45 }
  0xea   : > { %v576_v15 = vadd.f32 %v575_v11, %v1139_v45  ;;  %v557_v16 = vpop.f32.mrf.mxu0  ;;  %v577_v17 = vpop.f32.mrf.mxu1 }
  0xeb   : > { %617 = vst.msk [vmem:[%s1145_s17 + $0x8] sm:$0xf] %vm614_vm1, %v951_v12  ;;  %621 = vst.msk [vmem:[%s1145_s17 + $0x18] sm:$0xf] %vm614_vm1, %v955_v13  ;;  %v959_v18 = vpack.c.bf16 %v556_v14, %v556_v14  ;;  %v558_v20 = vadd.f32 %v557_v16, %v449_v44  ;;  %v578_v21 = vadd.f32 %v577_v17, %v449_v44 }
  0xec   : > { %v963_v19 = vpack.c.bf16 %v576_v15, %v576_v15  ;;  %627 = vrot.lane.b32.xlu1 %v951_v12, %s1036_s20  ;;  %625 = vrot.lane.b32.xlu0 %v950_v0, %s1036_s20  ;;  %v559_v22 = vpop.f32.mrf.mxu0  ;;  %v579_v23 = vpop.f32.mrf.mxu1 }
  0xed   : > { %689 = vst.msk [vmem:[%s1153_s19 + $0x8] sm:$0xf] %vm614_vm1, %v959_v18  ;;  %v952_v24 = vpack.c.bf16 %v558_v20, %v558_v20  ;;  %v956_v25 = vpack.c.bf16 %v578_v21, %v578_v21  ;;  %v560_v26 = vadd.f32 %v559_v22, %v1139_v45  ;;  %v580_v27 = vadd.f32 %v579_v23, %v1139_v45 }
  0xee   : > { %693 = vst.msk [vmem:[%s1153_s19 + $0x18] sm:$0xf] %vm614_vm1, %v963_v19 }
  0xef   : > { %618 = vst.msk [vmem:[%s1145_s17 + $0xc] sm:$0xf] %vm614_vm1, %v952_v24  ;;  %622 = vst.msk [vmem:[%s1145_s17 + $0x1c] sm:$0xf] %vm614_vm1, %v956_v25  ;;  %v960_v28 = vpack.c.bf16 %v560_v26, %v560_v26  ;;  %v964_v29 = vpack.c.bf16 %v580_v27, %v580_v27 }
  0xf0   : > { %629 = vrot.lane.b32.xlu1 %v952_v24, %s1036_s20  ;;  %635 = vrot.lane.b32.xlu0 %v955_v13, %s1036_s20 }
  0xf1   : > { %690 = vst.msk [vmem:[%s1153_s19 + $0xc] sm:$0xf] %vm614_vm1, %v960_v28  ;;  %694 = vst.msk [vmem:[%s1153_s19 + $0x1c] sm:$0xf] %vm614_vm1, %v964_v29 }
  0xf4   : > { %637 = vrot.lane.b32.xlu1 %v956_v25, %s1036_s20 }
 0x155   : > { %v624_v30 = vpop.permute.xlu0 %623 }
 0x156   : > { %647 = vst.msk [vmem:[%s381_s23] sm:$0xf] %vm614_vm1, %v624_v30 }
 0x15a   : > { %v634_v31 = vpop.permute.xlu1 %633  ;;  %v632_v32 = vpop.permute.xlu0 %631 }
 0x15b   : > { %652 = vst.msk [vmem:[%s381_s23 + $0x14] sm:$0xf] %vm614_vm1, %v634_v31  ;;  %651 = vst.msk [vmem:[%s381_s23 + $0x10] sm:$0xf] %vm614_vm1, %v632_v32 }
 0x15e   : > { %v628_v33 = vpop.permute.xlu1 %627  ;;  %v626_v34 = vpop.permute.xlu0 %625 }
 0x15f   : > { %649 = vst.msk [vmem:[%s381_s23 + $0x8] sm:$0xf] %vm614_vm1, %v628_v33  ;;  %648 = vst.msk [vmem:[%s381_s23 + $0x4] sm:$0xf] %vm614_vm1, %v626_v34 }
 0x162   : > { %v630_v35 = vpop.permute.xlu1 %629  ;;  %v636_v36 = vpop.permute.xlu0 %635 }
 0x163   : > { %650 = vst.msk [vmem:[%s381_s23 + $0xc] sm:$0xf] %vm614_vm1, %v630_v35  ;;  %653 = vst.msk [vmem:[%s381_s23 + $0x18] sm:$0xf] %vm614_vm1, %v636_v36 }
 0x166   : > { %v638_v37 = vpop.permute.xlu1 %637 }
 0x167   : > { %654 = vst.msk [vmem:[%s381_s23 + $0x1c] sm:$0xf] %vm614_vm1, %v638_v37 }
 0x168 PF: > { %s18_s26 = sadd.s32 1, %s1033_s26   ;;  %s1230_s24 = smov %s1029_s25 }
 0x169   : > { %p15_p5 = scmp.ge.s32.totalorder %s18_s26, 4   ;;  %s1231_s25 = smov %s1233_s27 }
 0x16b   :  { %17 = sbr.rel (!%p15_p5) target bundleno = 2 (0x2), region = 100 }

// kernel: self_attention_pallas.3
= control target key start
LH: loop header
LB: loop body
LE: loop exit
PB: predicated region body
PF: predicated region fallthrough
CT: control target
= control target key end

     0   :  { %s1606_s21 = smov 0   ;;  %s1608_s22 = smov 0   ;;  %s1912_s0 = inlined_call_operand.vmem [shape: bf16[2,64,64], index: 0, kind: input, shape index: {}]   ;;  %s1913_s1 = inlined_call_operand.vmem [shape: bf16[2,64,64], index: 1, kind: input, shape index: {}]   ;;  %s1914_s2 = inlined_call_operand.vmem [shape: bf16[2,64,64], index: 2, kind: input, shape index: {}]   ;;  %s1915_s3 = inlined_call_operand.vmem [shape: f32[2,64,64], index: 3, kind: input, shape index: {}]   ;;  %s1916_s4 = inlined_call_operand.vmem [shape: bf16[64,64], index: 4, kind: input, shape index: {}]   ;;  %s1917_s5 = inlined_call_operand.vmem [shape: f32[1,64], index: 5, kind: input, shape index: {}]   ;;  %s1918_s6 = inlined_call_operand.vmem [shape: f32[2,64,64], index: 6, kind: output, shape index: {}]  }
   0x1   :  { %s1610_s23 = smov 0  }
   0x2 LB: > { %s35_s24 = sadd.s32 1, %s1562_s22  ;;  %p1328_p0 = scmp.ge.s32.totalorder %s1566_s23, 1  ;;  %s1566_s23 = sphi %s1610_s23, %s16_s23   ;;  %s1562_s22 = sphi %s1608_s22, %s1920_s22   ;;  %s1558_s21 = sphi %s1606_s21, %s1919_s21  }
   0x3   : > { %p37_p1 = scmp.ge.s32.totalorder %s35_s24, 2  ;;  %p291_p2 = scmp.lt.s32.totalorder %s1566_s23, 3 }
   0x5   : > { %s1922_s24 = smov (%p37_p1, %s35_s24), 0  ;;  %p292_p3 = pnand %p1328_p0, %p291_p2 }
   0x6   : > { %p357_p4 = scmp.lt.s32.totalorder (!%p292_p3), %s1558_s21, 1 }
   0x7   : > { %295 = sbr.rel (%p292_p3) target bundleno = 1046 (0x416), region = 44 }
   0xc   : > { %s1924_s21 = smov (!%p357_p4, %s1558_s21), 1  ;;  %vm428_vm0 = vcmask 523264   ;;  %vm411_vm1 = vcmask 7168   ;;  %v1568_v12 = vmov -inf   ;;  %v1569_v25 = vmov 0  }
   0xd   : > { %s1627_s25 = sshll.u32 %s1924_s21, 5  ;;  %414 = vst.msk [vmem:[#allocation2 + $0x10] sm:$0xff] %vm411_vm1, %v1568_v12  ;;  %412 = vst.msk [vmem:[#allocation2] sm:$0xff] %vm411_vm1, %v1568_v12  ;;  %1479 = vset.pattern.permute.xlu1 %v1569_v25  ;;  %1478 = vset.pattern.permute.xlu0 %v1569_v25  ;;  %v1570_v30 = vmov 0.0   ;;  %s1373_s19 = sshll.u32 %s1924_s21, 6 }
   0xe   : > { %s374_s28 = scalar_lea.vmem %s1913_s1, %s1627_s25  ;;  %s364_s7 = scalar_lea.vmem %s1912_s0, %s1627_s25  ;;  %413 = vst.msk [vmem:[#allocation2 + $0x8] sm:$0xff] %vm411_vm1, %v1568_v12  ;;  %415 = vst.msk [vmem:[#allocation2 + $0x18] sm:$0xff] %vm411_vm1, %v1568_v12 }
   0xf   : > { %v1480_v0 = vld [vmem:[%s374_s28 + $0x18] sm:$0xff]   ;;  %v1481_v1 = vld [vmem:[%s374_s28 + $0x10] sm:$0xff]   ;;  %v1484_v3 = vld [vmem:[%s364_s7] sm:$0xff]   ;;  %416 = vst.msk [vmem:[#allocation2 + $0x20] sm:$0xff] %vm411_vm1, %v1568_v12  ;;  %s384_s10 = scalar_lea.vmem %s1914_s2, %s1627_s25  ;;  %s1869_s26 = scalar_lea.vmem %s1915_s3, %s1373_s19 }
  0x10   : > { %1447 = vmatprep.subr.msk.bf16.mxu0 %vm428_vm0, %v1480_v0  ;;  %v524_v2 = vsel %vm428_vm0, %v1480_v0, 0  ;;  %1407 = vmatprep.mubr.msk.bf16.mxu0 %vm428_vm0, %v1484_v3  ;;  %v521_v4 = vsel %vm428_vm0, %v1481_v1, 0  ;;  %v1482_v5 = vld [vmem:[%s374_s28 + $0x8] sm:$0xff]   ;;  %v1483_v7 = vld [vmem:[%s374_s28] sm:$0xff]   ;;  %v1486_v10 = vld [vmem:[%s364_s7 + $0x10] sm:$0xff]   ;;  %417 = vst.msk [vmem:[#allocation2 + $0x28] sm:$0xff] %vm411_vm1, %v1568_v12  ;;  %s1878_s21 = scalar_lea.vmem %s1918_s6, %s1373_s19 }
  0x11   : > { %1400 = vmatpush3.bf16.xpose.msra.mxu0 %v524_v2  ;;  %v518_v6 = vsel %vm428_vm0, %v1482_v5, 0  ;;  %v515_v8 = vsel %vm428_vm0, %v1483_v7, 0  ;;  %v1485_v9 = vld [vmem:[%s364_s7 + $0x8] sm:$0xff]   ;;  %v1487_v11 = vld [vmem:[%s364_s7 + $0x18] sm:$0xff]   ;;  %418 = vst.msk [vmem:[#allocation2 + $0x30] sm:$0xff] %vm411_vm1, %v1568_v12  ;;  %419 = vst.msk [vmem:[#allocation2 + $0x38] sm:$0xff] %vm411_vm1, %v1568_v12 }
  0x12   : > { %1448 = vmatprep.subr.msk.bf16.mxu0 %vm428_vm0, %v1481_v1  ;;  %420 = vst.msk [vmem:[#allocation3] sm:$0xff] %vm411_vm1, %v1570_v30  ;;  %421 = vst.msk [vmem:[#allocation3 + $0x8] sm:$0xff] %vm411_vm1, %v1570_v30  ;;  %v1488_v52 = vld [vmem:[%s384_s10 + $0x18] sm:$0xff]   ;;  %v1489_v58 = vld [vmem:[%s384_s10 + $0x10] sm:$0xff]  }
  0x13   : > { %422 = vst.msk [vmem:[#allocation3 + $0x10] sm:$0xff] %vm411_vm1, %v1570_v30  ;;  %423 = vst.msk [vmem:[#allocation3 + $0x18] sm:$0xff] %vm411_vm1, %v1570_v30  ;;  %1415 = vmatprep.subr.bf16.mxu1 %v1488_v52  ;;  %v1490_v0 = vld [vmem:[%s384_s10 + $0x8] sm:$0xff]   ;;  %v1491_v2 = vld [vmem:[%s384_s10] sm:$0xff]  }
  0x14   : > { %424 = vst.msk [vmem:[#allocation3 + $0x20] sm:$0xff] %vm411_vm1, %v1570_v30  ;;  %425 = vst.msk [vmem:[#allocation3 + $0x28] sm:$0xff] %vm411_vm1, %v1570_v30  ;;  %v1705_v31 = vld [vmem:[#allocation2 + $0x10] sm:$0xff]  ;;  %v1707_v33 = vld [vmem:[#allocation2] sm:$0xff]  ;;  %1416 = vmatpush3.bf16.msra.mxu1 %v1488_v52 }
  0x15   : > { %426 = vst.msk [vmem:[#allocation3 + $0x30] sm:$0xff] %vm411_vm1, %v1570_v30  ;;  %427 = vst.msk [vmem:[#allocation3 + $0x38] sm:$0xff] %vm411_vm1, %v1570_v30  ;;  %v1712_v36 = vld [vmem:[#allocation2 + $0x18] sm:$0xff]  ;;  %v1722_v40 = vld [vmem:[#allocation2 + $0x8] sm:$0xff]  ;;  %1417 = vmatprep.subr.bf16.mxu1 %v1489_v58 }
  0x16   : > { %429 = vst.msk [vmem:[#allocation4] sm:$0xff] %vm428_vm0, %v1570_v30  ;;  %430 = vst.msk [vmem:[#allocation4 + $0x8] sm:$0xff] %vm428_vm0, %v1570_v30  ;;  %v1740_v46 = vld [vmem:[#allocation2 + $0x20] sm:$0xff] }
  0x17   : > { %431 = vst.msk [vmem:[#allocation4 + $0x10] sm:$0xff] %vm428_vm0, %v1570_v30  ;;  %432 = vst.msk [vmem:[#allocation4 + $0x18] sm:$0xff] %vm428_vm0, %v1570_v30  ;;  %v1756_v51 = vld [vmem:[#allocation2 + $0x28] sm:$0xff] }
  0x18   : > { %433 = vst.msk [vmem:[#allocation4 + $0x20] sm:$0xff] %vm428_vm0, %v1570_v30  ;;  %434 = vst.msk [vmem:[#allocation4 + $0x28] sm:$0xff] %vm428_vm0, %v1570_v30  ;;  %v1746_v49 = vld [vmem:[#allocation2 + $0x30] sm:$0xff]  ;;  %v1768_v59 = vld [vmem:[#allocation2 + $0x38] sm:$0xff]  ;;  %1418 = vmatpush3.bf16.msra.mxu1 %v1489_v58 }
  0x19   : > { %1402 = vmatpush3.bf16.xpose.msra.mxu0 %v521_v4  ;;  %435 = vst.msk [vmem:[#allocation4 + $0x30] sm:$0xff] %vm428_vm0, %v1570_v30  ;;  %436 = vst.msk [vmem:[#allocation4 + $0x38] sm:$0xff] %vm428_vm0, %v1570_v30  ;;  %1419 = vmatprep.subr.bf16.mxu1 %v1490_v0 }
  0x1a   : > { %1449 = vmatprep.subr.msk.bf16.mxu0 %vm428_vm0, %v1482_v5 }
  0x1c   : > { %1420 = vmatpush3.bf16.msra.mxu1 %v1490_v0 }
  0x1d   : > { %1421 = vmatprep.subr.bf16.mxu1 %v1491_v2 }
  0x20   : > { %1422 = vmatpush3.bf16.msra.mxu1 %v1491_v2 }
  0x21   : > { %1404 = vmatpush3.bf16.xpose.msra.mxu0 %v518_v6 }
  0x22   : > { %1450 = vmatprep.subr.msk.bf16.mxu0 %vm428_vm0, %v1483_v7 }
  0x29   : > { %1406 = vmatpush3.bf16.xpose.msra.mxu0 %v515_v8 }
  0x30   : > { %1408 = vmatmul.mubr.msk.bf16.vlgmr.msra.gmra.mxu0 %vm428_vm0, %v1485_v9 }
  0x31   : > { %1411 = vmatprep.mubr.msk.bf16.mxu0 %vm428_vm0, %v1486_v10 }
  0x38   : > { %1412 = vmatmul.mubr.msk.bf16.gmra.mxu0 %vm428_vm0, %v1487_v11 }
  0xf0   : > { %v1657_v13 = vpop.f32.mrf.mxu0 }
  0xf1   : > { %v605_v14 = vsel %vm428_vm0, %v1657_v13, -inf }
  0xf2   : > { %606 = vmax.xlane.f32.xlu1 %v605_v14  ;;  %v1661_v15 = vpop.f32.mrf.mxu0 }
  0xf3   : > { %v599_v16 = vsel %vm428_vm0, %v1661_v15, -inf }
  0xf4   : > { %600 = vmax.xlane.f32.xlu0 %v599_v16  ;;  %v1665_v17 = vpop.f32.mrf.mxu0 }
  0xf5   : > { %v608_v18 = vsel %vm428_vm0, %v1665_v17, -inf }
  0xf6   : > { %609 = vmax.xlane.f32.xlu1 %v608_v18  ;;  %v1669_v19 = vpop.f32.mrf.mxu0 }
  0xf7   : > { %v602_v20 = vsel %vm428_vm0, %v1669_v19, -inf }
  0xf8   : > { %603 = vmax.xlane.f32.xlu0 %v602_v20  ;;  %v1673_v21 = vpop.f32.mrf.mxu0 }
  0xf9   : > { %v617_v27 = vsel %vm428_vm0, %v1673_v21, -inf }
  0xfa   : > { %v1675_v22 = vpop.f32.mrf.mxu0 }
  0xfb   : > { %v611_v23 = vsel %vm428_vm0, %v1675_v22, -inf }
  0xfc   : > { %612 = vmax.xlane.f32.xlu0 %v611_v23  ;;  %v1679_v24 = vpop.f32.mrf.mxu0 }
  0xfd   : > { %v620_v29 = vsel %vm428_vm0, %v1679_v24, -inf }
  0xfe   : > { %v1681_v26 = vpop.f32.mrf.mxu0 }
  0xff   : > { %v614_v28 = vsel %vm428_vm0, %v1681_v26, -inf }
 0x100   : > { %618 = vmax.xlane.f32.xlu0 %v617_v27  ;;  %615 = vmax.xlane.f32.xlu1 %v614_v28 }
 0x104   : > { %621 = vmax.xlane.f32.xlu1 %v620_v29 }
 0x17b   : > { %v607_v32 = vpop.xlane.xlu1 %606 }
 0x17c   : > { %v1710_v34 = vmax.f32 %v1705_v31, %v607_v32 }
 0x17d   : > { %v601_v35 = vpop.xlane.xlu0 %600 }
 0x17e   : > { %v633_v37 = vsub.f32 %v1705_v31, %v1710_v34  ;;  %955 = vst.msk [vmem:[#allocation2 + $0x10] sm:$0xff] %vm411_vm1, %v1710_v34  ;;  %v1719_v38 = vmax.f32 %v1707_v33, %v601_v35  ;;  %667 = vperm.xlu1 %1479, %v1710_v34  }
 0x17f   : > { %v610_v39 = vpop.xlane.xlu1 %609 }
 0x180   : > { %v631_v41 = vsub.f32 %v1707_v33, %v1719_v38  ;;  %953 = vst.msk [vmem:[#allocation2] sm:$0xff] %vm411_vm1, %v1719_v38  ;;  %v1729_v42 = vmax.f32 %v1712_v36, %v610_v39  ;;  %657 = vperm.xlu0 %1478, %v1719_v38  }
 0x181   : > { %v604_v43 = vpop.xlane.xlu0 %603 }
 0x182   : > { %v634_v44 = vsub.f32 %v1712_v36, %v1729_v42  ;;  %956 = vst.msk [vmem:[#allocation2 + $0x18] sm:$0xff] %vm411_vm1, %v1729_v42  ;;  %v1737_v45 = vmax.f32 %v1722_v40, %v604_v43  ;;  %672 = vperm.xlu1 %1479, %v1729_v42  }
 0x184   : > { %v632_v47 = vsub.f32 %v1722_v40, %v1737_v45  ;;  %954 = vst.msk [vmem:[#allocation2 + $0x8] sm:$0xff] %vm411_vm1, %v1737_v45  ;;  %v645_v40 = vmul.f32 1.442695, %v634_v44 }
 0x185   : > { %v613_v48 = vpop.xlane.xlu0 %612 }
 0x186   : > { %v1753_v50 = vmax.f32 %v1740_v46, %v613_v48  ;;  %662 = vperm.xlu1 %1479, %v1737_v45  }
 0x188   : > { %v635_v53 = vsub.f32 %v1740_v46, %v1753_v50  ;;  %957 = vst.msk [vmem:[#allocation2 + $0x20] sm:$0xff] %vm411_vm1, %v1753_v50 }
 0x189   : > { %v619_v54 = vpop.xlane.xlu0 %618  ;;  %v616_v55 = vpop.xlane.xlu1 %615 }
 0x18a   : > { %v1763_v56 = vmax.f32 %v1746_v49, %v619_v54  ;;  %v1766_v57 = vmax.f32 %v1756_v51, %v616_v55  ;;  %v647_v45 = vmul.f32 1.442695, %v635_v53 }
 0x18c   : > { %v637_v60 = vsub.f32 %v1746_v49, %v1763_v56  ;;  %959 = vst.msk [vmem:[#allocation2 + $0x30] sm:$0xff] %vm411_vm1, %v1763_v56  ;;  %v636_v61 = vsub.f32 %v1756_v51, %v1766_v57  ;;  %958 = vst.msk [vmem:[#allocation2 + $0x28] sm:$0xff] %vm411_vm1, %v1766_v57  ;;  %687 = vperm.xlu1 %1479, %v1763_v56   ;;  %v1492_v49 = vld [vmem:[%s1916_s4 + $0x18] sm:$0xff]  }
 0x18d   : > { %v622_v62 = vpop.xlane.xlu1 %621  ;;  %1431 = vmatprep.subr.bf16.mxu1 %v1492_v49  ;;  %v722_v56 = vld [vmem:[#allocation3 + $0x18] sm:$0xff] }
 0x18e   : > { %v1780_v63 = vmax.f32 %v1768_v59, %v622_v62  ;;  %v649_v33 = vmul.f32 1.442695, %v636_v61  ;;  %v651_v31 = vmul.f32 1.442695, %v637_v60 }
 0x190   : > { %v638_v1 = vsub.f32 %v1768_v59, %v1780_v63  ;;  %960 = vst.msk [vmem:[#allocation2 + $0x38] sm:$0xff] %vm411_vm1, %v1780_v63  ;;  %677 = vperm.xlu1 %1479, %v1753_v50   ;;  %v719_v50 = vld [vmem:[#allocation3] sm:$0xff]  ;;  %v720_v59 = vld [vmem:[#allocation3 + $0x8] sm:$0xff] }
 0x192   : > { %v653_v34 = vmul.f32 1.442695, %v638_v1 }
 0x194   : > { %682 = vperm.xlu1 %1479, %v1766_v57  }
 0x198   : > { %692 = vperm.xlu1 %1479, %v1780_v63  }
 0x1f9   : > { %v668_v3 = vpop.permute.xlu1 %667 }
 0x1fa   : > { %v697_v9 = vsub.f32 %v1657_v13, %v668_v3 }
 0x1fb   : > { %v658_v4 = vpop.permute.xlu0 %657 }
 0x1fc   : > { %v695_v5 = vsub.f32 %v1661_v15, %v658_v4  ;;  %v707_v14 = vmul.f32 1.442695, %v697_v9  ;;  %v643_v9 = vmul.f32 1.442695, %v633_v37 }
 0x1fd   : > { %v673_v6 = vpop.permute.xlu1 %672 }
 0x1fe   : > { %v703_v7 = vmul.f32 1.442695, %v695_v5  ;;  %v698_v8 = vsub.f32 %v1665_v17, %v673_v6  ;;  %v641_v5 = vmul.f32 1.442695, %v632_v47 }
 0x200   : > { %1496 = vpow2.f32 %v703_v7  ;;  %v709_v10 = vmul.f32 1.442695, %v698_v8  ;;  %v639_v8 = vmul.f32 1.442695, %v631_v41 }
 0x201   : > { %v663_v11 = vpop.permute.xlu1 %662 }
 0x202   : > { %1498 = vpow2.f32 %v709_v10  ;;  %v696_v12 = vsub.f32 %v1669_v19, %v663_v11  ;;  %v721_v11 = vld [vmem:[#allocation3 + $0x10] sm:$0xff] }
 0x204   : > { %v705_v16 = vmul.f32 1.442695, %v696_v12 }
 0x206   : > { %1500 = vpow2.f32 %v705_v16 }
 0x207   : > { %1502 = vpow2.f32 %v707_v14  ;;  %v688_v18 = vpop.permute.xlu1 %687 }
 0x208   : > { %v701_v20 = vsub.f32 %v1673_v21, %v688_v18 }
 0x20a   : > { %v715_v17 = vmul.f32 1.442695, %v701_v20 }
 0x20b   : > { %v678_v15 = vpop.permute.xlu1 %677 }
 0x20c   : > { %v699_v23 = vsub.f32 %v1675_v22, %v678_v15  ;;  %v723_v15 = vld [vmem:[#allocation3 + $0x20] sm:$0xff] }
 0x20d   : > { %v1497_v25 = vpop.eup %1496 }
 0x20e   : > { %v711_v27 = vmul.f32 1.442695, %v699_v23  ;;  %v735_v13 = vsel %vm428_vm0, %v1497_v25, 0.0 }
 0x20f   : > { %v1499_v28 = vpop.eup %1498  ;;  %736 = vadd.xlane.f32.xlu1 %v735_v13  ;;  %v683_v29 = vpop.permute.xlu1 %682 }
 0x210   : > { %1504 = vpow2.f32 %v711_v27  ;;  %v700_v19 = vsub.f32 %v1681_v26, %v683_v29  ;;  %v744_v32 = vsel %vm428_vm0, %v1499_v28, 0.0  ;;  %v724_v27 = vld [vmem:[#allocation3 + $0x28] sm:$0xff] }
 0x211   : > { %1506 = vpow2.f32 %v715_v17  ;;  %v725_v17 = vld [vmem:[#allocation3 + $0x30] sm:$0xff] }
 0x212   : > { %v713_v30 = vmul.f32 1.442695, %v700_v19 }
 0x213   : > { %v1501_v35 = vpop.eup %1500  ;;  %745 = vadd.xlane.f32.xlu1 %v744_v32  ;;  %v693_v21 = vpop.permute.xlu1 %692 }
 0x214   : > { %v1503_v39 = vpop.eup %1502  ;;  %1508 = vpow2.f32 %v713_v30  ;;  %v702_v22 = vsub.f32 %v1679_v24, %v693_v21  ;;  %v738_v43 = vsel %vm428_vm0, %v1501_v35, 0.0  ;;  %v832_v48 = vpack.c.bf16 %v1501_v35, %v1497_v25  ;;  %v726_v21 = vld [vmem:[#allocation3 + $0x38] sm:$0xff] }
 0x215   : > { %739 = vadd.xlane.f32.xlu0 %v738_v43  ;;  %v833_v52 = vpack.c.bf16 %v1499_v28, %v1503_v39  ;;  %v741_v26 = vsel %vm428_vm0, %v1503_v39, 0.0 }
 0x216   : > { %v717_v54 = vmul.f32 1.442695, %v702_v22  ;;  %1423 = vmatprep.mubr.msk.bf16.mxu1 %vm428_vm0, %v832_v48  ;;  %v1493_v48 = vld [vmem:[%s1916_s4 + $0x10] sm:$0xff]  }
 0x217   : > { %1424 = vmatmul.mubr.msk.bf16.vlgmr.msra.gmra.mxu1 %vm428_vm0, %v833_v52 }
 0x218   : > { %1510 = vpow2.f32 %v717_v54  ;;  %1432 = vmatpush3.bf16.msra.mxu1 %v1492_v49 }
 0x219   : > { %742 = vadd.xlane.f32.xlu0 %v741_v26  ;;  %1512 = vpow2.f32 %v641_v5  ;;  %1433 = vmatprep.subr.bf16.mxu1 %v1493_v48 }
 0x21a   : > { %1514 = vpow2.f32 %v639_v8 }
 0x21b   : > { %1516 = vpow2.f32 %v643_v9 }
 0x21c   : > { %1518 = vpow2.f32 %v645_v40  ;;  %1434 = vmatpush3.bf16.msra.mxu1 %v1493_v48 }
 0x21d   : > { %v1505_v55 = vpop.eup %1504  ;;  %1520 = vpow2.f32 %v647_v45 }
 0x21e   : > { %v747_v58 = vsel %vm428_vm0, %v1505_v55, 0.0  ;;  %v1507_v62 = vpop.eup %1506  ;;  %1522 = vpow2.f32 %v649_v33 }
 0x21f   : > { %748 = vadd.xlane.f32.xlu0 %v747_v58  ;;  %v753_v0 = vsel %vm428_vm0, %v1507_v62, 0.0  ;;  %1524 = vpow2.f32 %v651_v31  ;;  %v778_v31 = vld [vmem:[#allocation4 + $0x10] sm:$0xff] }
 0x220   : > { %1526 = vpow2.f32 %v653_v34 }
 0x221   : > { %v1509_v24 = vpop.eup %1508 }
 0x222   : > { %v750_v2 = vsel %vm428_vm0, %v1509_v24, 0.0  ;;  %v834_v3 = vpack.c.bf16 %v1509_v24, %v1505_v55 }
 0x223   : > { %754 = vadd.xlane.f32.xlu0 %v753_v0  ;;  %751 = vadd.xlane.f32.xlu1 %v750_v2 }
 0x224   : > { %1427 = vmatprep.mubr.msk.bf16.mxu1 %vm428_vm0, %v834_v3  ;;  %v1495_v3 = vld [vmem:[%s1916_s4] sm:$0xff]  }
 0x225   : > { %v1511_v4 = vpop.eup %1510 }
 0x226   : > { %v756_v6 = vsel %vm428_vm0, %v1511_v4, 0.0  ;;  %v835_v7 = vpack.c.bf16 %v1511_v4, %v1507_v62  ;;  %v1513_v36 = vpop.eup %1512  ;;  %v1494_v62 = vld [vmem:[%s1916_s4 + $0x8] sm:$0xff]  }
 0x227   : > { %757 = vadd.xlane.f32.xlu1 %v756_v6  ;;  %v1515_v37 = vpop.eup %1514  ;;  %v728_v1 = vmul.f32 %v1513_v36, %v720_v59  ;;  %1435 = vmatprep.subr.bf16.mxu1 %v1494_v62 }
 0x228   : > { %1428 = vmatmul.mubr.msk.bf16.gmra.mxu1 %vm428_vm0, %v835_v7  ;;  %v1517_v38 = vpop.eup %1516  ;;  %v727_v51 = vmul.f32 %v1515_v37, %v719_v50 }
 0x229   : > { %v1519_v41 = vpop.eup %1518  ;;  %v729_v14 = vmul.f32 %v1517_v38, %v721_v11  ;;  %1436 = vmatpush3.bf16.msra.mxu1 %v1494_v62  ;;  %v780_v11 = vld [vmem:[#allocation4 + $0x20] sm:$0xff] }
 0x22a   : > { %v1521_v42 = vpop.eup %1520  ;;  %v730_v60 = vmul.f32 %v1519_v41, %v722_v56  ;;  %1437 = vmatprep.subr.bf16.mxu1 %v1495_v3 }
 0x22b   : > { %v1523_v44 = vpop.eup %1522  ;;  %v731_v23 = vmul.f32 %v1521_v42, %v723_v15 }
 0x22c   : > { %v1525_v46 = vpop.eup %1524  ;;  %v732_v30 = vmul.f32 %v1523_v44, %v724_v27 }
 0x22d   : > { %v1527_v47 = vpop.eup %1526  ;;  %v733_v19 = vmul.f32 %v1525_v46, %v725_v17  ;;  %1438 = vmatpush3.bf16.msra.mxu1 %v1495_v3 }
 0x22e   : > { %v734_v52 = vmul.f32 %v1527_v47, %v726_v21 }
 0x238   : > { %791 = vperm.xlu1 %1479, %v1513_v36   ;;  %v776_v36 = vld [vmem:[#allocation4] sm:$0xff] }
 0x239   : > { %786 = vperm.xlu0 %1478, %v1515_v37  }
 0x23c   : > { %796 = vperm.xlu1 %1479, %v1517_v38   ;;  %v779_v38 = vld [vmem:[#allocation4 + $0x18] sm:$0xff] }
 0x23d   : > { %801 = vperm.xlu0 %1478, %v1519_v41  }
 0x240   : > { %806 = vperm.xlu1 %1479, %v1521_v42  }
 0x241   : > { %811 = vperm.xlu0 %1478, %v1523_v44  }
 0x244   : > { %816 = vperm.xlu1 %1479, %v1525_v46  }
 0x245   : > { %821 = vperm.xlu0 %1478, %v1527_v47   ;;  %v777_v47 = vld [vmem:[#allocation4 + $0x8] sm:$0xff] }
 0x298   : > { %v737_v53 = vpop.xlane.xlu1 %736 }
 0x299   : > { %v759_v57 = vadd.f32 %v737_v53, %v727_v51 }
 0x29b   : > { %768 = vst.msk [vmem:[#allocation3] sm:$0xff] %vm411_vm1, %v759_v57 }
 0x29c   : > { %v746_v61 = vpop.xlane.xlu1 %745 }
 0x29d   : > { %v762_v63 = vadd.f32 %v746_v61, %v730_v60 }
 0x29e   : > { %v740_v10 = vpop.xlane.xlu0 %739 }
 0x29f   : > { %771 = vst.msk [vmem:[#allocation3 + $0x18] sm:$0xff] %vm411_vm1, %v762_v63  ;;  %v760_v12 = vadd.f32 %v740_v10, %v728_v1  ;;  %v782_v1 = vld [vmem:[#allocation4 + $0x30] sm:$0xff] }
 0x2a1   : > { %769 = vst.msk [vmem:[#allocation3 + $0x8] sm:$0xff] %vm411_vm1, %v760_v12 }
 0x2a2   : > { %v743_v16 = vpop.xlane.xlu0 %742  ;;  %v964_v18 = vld [vmem:[#allocation3] sm:$0xff] }
 0x2a3   : > { %v761_v20 = vadd.f32 %v743_v16, %v729_v14  ;;  %1528 = vrcp.f32 %v964_v18  ;;  %v783_v14 = vld [vmem:[#allocation4 + $0x38] sm:$0xff] }
 0x2a5   : > { %770 = vst.msk [vmem:[#allocation3 + $0x10] sm:$0xff] %vm411_vm1, %v761_v20 }
 0x2a6   : > { %v967_v29 = vld [vmem:[#allocation3 + $0x18] sm:$0xff] }
 0x2a8   : > { %v749_v25 = vpop.xlane.xlu0 %748  ;;  %v965_v13 = vld [vmem:[#allocation3 + $0x8] sm:$0xff] }
 0x2a9   : > { %v763_v28 = vadd.f32 %v749_v25, %v731_v23  ;;  %1530 = vrcp.f32 %v965_v13  ;;  %v781_v23 = vld [vmem:[#allocation4 + $0x28] sm:$0xff] }
 0x2aa   : > { %1532 = vrcp.f32 %v967_v29 }
 0x2ab   : > { %772 = vst.msk [vmem:[#allocation3 + $0x20] sm:$0xff] %vm411_vm1, %v763_v28 }
 0x2ac   : > { %v755_v32 = vpop.xlane.xlu0 %754  ;;  %v752_v35 = vpop.xlane.xlu1 %751  ;;  %v966_v39 = vld [vmem:[#allocation3 + $0x10] sm:$0xff] }
 0x2ad   : > { %v765_v22 = vadd.f32 %v755_v32, %v733_v19  ;;  %v764_v43 = vadd.f32 %v752_v35, %v732_v30  ;;  %1534 = vrcp.f32 %v966_v39 }
 0x2af   : > { %774 = vst.msk [vmem:[#allocation3 + $0x30] sm:$0xff] %vm411_vm1, %v765_v22  ;;  %773 = vst.msk [vmem:[#allocation3 + $0x28] sm:$0xff] %vm411_vm1, %v764_v43 }
 0x2b0   : > { %v1529_v54 = vpop.eup %1528  ;;  %v758_v26 = vpop.xlane.xlu1 %757 }
 0x2b1   : > { %v766_v55 = vadd.f32 %v758_v26, %v734_v52  ;;  %990 = vperm.xlu1 %1479, %v1529_v54  }
 0x2b2   : > { %v968_v58 = vld [vmem:[#allocation3 + $0x20] sm:$0xff] }
 0x2b3   : > { %775 = vst.msk [vmem:[#allocation3 + $0x38] sm:$0xff] %vm411_vm1, %v766_v55  ;;  %1536 = vrcp.f32 %v968_v58 }
 0x2b4   : > { %v792_v45 = vpop.permute.xlu1 %791  ;;  %v787_v33 = vpop.permute.xlu0 %786 }
 0x2b5   : > { %v824_v44 = vmul.f32 %v787_v33, %v776_v36  ;;  %v825_v56 = vmul.f32 %v792_v45, %v777_v47  ;;  %v1359_v36 = vld [vmem:[%s1917_s5] ss:$0 sm:$0xff] }
 0x2b6   : > { %v1531_v24 = vpop.eup %1530  ;;  %v970_v0 = vld [vmem:[#allocation3 + $0x30] sm:$0xff]  ;;  %v969_v2 = vld [vmem:[#allocation3 + $0x28] sm:$0xff] }
 0x2b7   : > { %995 = vperm.xlu0 %1478, %v1531_v24   ;;  %1538 = vrcp.f32 %v970_v0  ;;  %v1533_v4 = vpop.eup %1532 }
 0x2b8   : > { %1540 = vrcp.f32 %v969_v2  ;;  %v797_v34 = vpop.permute.xlu1 %796  ;;  %v802_v41 = vpop.permute.xlu0 %801 }
 0x2b9   : > { %v826_v37 = vmul.f32 %v797_v34, %v778_v31  ;;  %v827_v50 = vmul.f32 %v802_v41, %v779_v38  ;;  %v1158_v38 = vld [vmem:[%s1869_s26 + $0x10] sm:$0xff] }
 0x2ba   : > { %v1535_v5 = vpop.eup %1534  ;;  %v971_v6 = vld [vmem:[#allocation3 + $0x38] sm:$0xff] }
 0x2bb   : > { %1000 = vperm.xlu1 %1479, %v1535_v5   ;;  %1005 = vperm.xlu0 %1478, %v1533_v4   ;;  %1542 = vrcp.f32 %v971_v6 }
 0x2bc   : > { %v807_v60 = vpop.permute.xlu1 %806  ;;  %v812_v63 = vpop.permute.xlu0 %811 }
 0x2bd   : > { %v828_v20 = vmul.f32 %v807_v60, %v780_v11  ;;  %v829_v28 = vmul.f32 %v812_v63, %v781_v23 }
 0x2c0   : > { %v1537_v7 = vpop.eup %1536  ;;  %v817_v10 = vpop.permute.xlu1 %816 }
 0x2c1   : > { %1010 = vperm.xlu1 %1479, %v1537_v7   ;;  %v830_v12 = vmul.f32 %v817_v10, %v782_v1  ;;  %v822_v16 = vpop.permute.xlu0 %821  ;;  %v1162_v1 = vld [vmem:[%s1869_s26 + $0x30] sm:$0xff] }
 0x2c2   : > { %v831_v17 = vmul.f32 %v822_v16, %v783_v14 }
 0x2c4   : > { %v1539_v8 = vpop.eup %1538 }
 0x2c5   : > { %v1541_v9 = vpop.eup %1540  ;;  %1020 = vperm.xlu1 %1479, %v1539_v8  }
 0x2c6   : > { %1015 = vperm.xlu0 %1478, %v1541_v9  }
 0x2c8   : > { %v1543_v40 = vpop.eup %1542 }
 0x2ca   : > { %1025 = vperm.xlu0 %1478, %v1543_v40  }
 0x2d7   : > { %v1425_v42 = vpop.f32.mrf.mxu1 }
 0x2d8   : > { %v939_v46 = vadd.f32 %v1425_v42, %v826_v37 }
 0x2d9   : > { %v906_v49 = vpop.f32.mrf.mxu1 }
 0x2da   : > { %947 = vst.msk [vmem:[#allocation4 + $0x10] sm:$0xff] %vm428_vm0, %v939_v46  ;;  %v937_v51 = vadd.f32 %v906_v49, %v824_v44  ;;  %v1156_v44 = vld [vmem:[%s1869_s26] sm:$0xff] }
 0x2db   : > { %v1426_v53 = vpop.f32.mrf.mxu1 }
 0x2dc   : > { %945 = vst.msk [vmem:[#allocation4] sm:$0xff] %vm428_vm0, %v937_v51  ;;  %v940_v57 = vadd.f32 %v1426_v53, %v827_v50  ;;  %v1159_v50 = vld [vmem:[%s1869_s26 + $0x18] sm:$0xff] }
 0x2dd   : > { %v909_v59 = vpop.f32.mrf.mxu1 }
 0x2de   : > { %948 = vst.msk [vmem:[#allocation4 + $0x18] sm:$0xff] %vm428_vm0, %v940_v57  ;;  %v938_v61 = vadd.f32 %v909_v59, %v825_v56  ;;  %v1157_v57 = vld [vmem:[%s1869_s26 + $0x8] sm:$0xff] }
 0x2e0   : > { %946 = vst.msk [vmem:[#allocation4 + $0x8] sm:$0xff] %vm428_vm0, %v938_v61 }
 0x2e1   : > { %v982_v26 = vld [vmem:[#allocation4 + $0x10] sm:$0xff] }
 0x2e3   : > { %v980_v35 = vld [vmem:[#allocation4] sm:$0xff] }
 0x2e5   : > { %v983_v52 = vld [vmem:[#allocation4 + $0x18] sm:$0xff] }
 0x2e7   : > { %v981_v39 = vld [vmem:[#allocation4 + $0x8] sm:$0xff] }
 0x2e8   : > { %v1429_v18 = vpop.f32.mrf.mxu1 }
 0x2e9   : > { %v943_v15 = vadd.f32 %v1429_v18, %v830_v12  ;;  %v1160_v12 = vld [vmem:[%s1869_s26 + $0x20] sm:$0xff] }
 0x2ea   : > { %v922_v25 = vpop.f32.mrf.mxu1 }
 0x2eb   : > { %951 = vst.msk [vmem:[#allocation4 + $0x30] sm:$0xff] %vm428_vm0, %v943_v15  ;;  %v941_v27 = vadd.f32 %v922_v25, %v828_v20  ;;  %v1163_v20 = vld [vmem:[%s1869_s26 + $0x38] sm:$0xff] }
 0x2ec   : > { %v1430_v13 = vpop.f32.mrf.mxu1 }
 0x2ed   : > { %949 = vst.msk [vmem:[#allocation4 + $0x20] sm:$0xff] %vm428_vm0, %v941_v27  ;;  %v944_v29 = vadd.f32 %v1430_v13, %v831_v17  ;;  %v1161_v17 = vld [vmem:[%s1869_s26 + $0x28] sm:$0xff] }
 0x2ee   : > { %v925_v19 = vpop.f32.mrf.mxu1 }
 0x2ef   : > { %952 = vst.msk [vmem:[#allocation4 + $0x38] sm:$0xff] %vm428_vm0, %v944_v29  ;;  %v942_v30 = vadd.f32 %v925_v19, %v829_v28 }
 0x2f1   : > { %950 = vst.msk [vmem:[#allocation4 + $0x28] sm:$0xff] %vm428_vm0, %v942_v30 }
 0x2f2   : > { %v986_v9 = vld [vmem:[#allocation4 + $0x30] sm:$0xff] }
 0x2f4   : > { %v984_v2 = vld [vmem:[#allocation4 + $0x20] sm:$0xff] }
 0x2f6   : > { %v987_v40 = vld [vmem:[#allocation4 + $0x38] sm:$0xff] }
 0x2f8   : > { %v985_v3 = vld [vmem:[#allocation4 + $0x28] sm:$0xff] }
 0x32c   : > { %v991_v32 = vpop.permute.xlu1 %990 }
 0x32d   : > { %v1028_v22 = vmul.f32 %v991_v32, %v980_v35 }
 0x332   : > { %v996_v21 = vpop.permute.xlu0 %995 }
 0x333   : > { %v1029_v43 = vmul.f32 %v996_v21, %v981_v39 }
 0x335   : > { %v1036_v48 = vpack.c.bf16 %v1029_v43, %v1028_v22 }
 0x336   : > { %v1006_v54 = vpop.permute.xlu0 %1005  ;;  %v1001_v55 = vpop.permute.xlu1 %1000 }
 0x337   : > { %v1031_v58 = vmul.f32 %v1006_v54, %v983_v52  ;;  %v1030_v62 = vmul.f32 %v1001_v55, %v982_v26  ;;  %1439 = vmatprep.mubr.msk.bf16.mxu1 %vm428_vm0, %v1036_v48 }
 0x339   : > { %v1037_v24 = vpack.c.bf16 %v1031_v58, %v1030_v62 }
 0x33b   : > { %1440 = vmatmul.mubr.msk.bf16.vlgmr.msra.gmra.mxu1 %vm428_vm0, %v1037_v24 }
 0x33c   : > { %v1011_v0 = vpop.permute.xlu1 %1010 }
 0x33d   : > { %v1032_v5 = vmul.f32 %v1011_v0, %v984_v2 }
 0x340   : > { %v1021_v7 = vpop.permute.xlu1 %1020 }
 0x341   : > { %v1016_v4 = vpop.permute.xlu0 %1015  ;;  %v1034_v33 = vmul.f32 %v1021_v7, %v986_v9 }
 0x342   : > { %v1033_v6 = vmul.f32 %v1016_v4, %v985_v3 }
 0x344   : > { %v1038_v8 = vpack.c.bf16 %v1033_v6, %v1032_v5 }
 0x345   : > { %v1026_v45 = vpop.permute.xlu0 %1025 }
 0x346   : > { %v1035_v31 = vmul.f32 %v1026_v45, %v987_v40  ;;  %1443 = vmatprep.mubr.msk.bf16.mxu1 %vm428_vm0, %v1038_v8 }
 0x348   : > { %v1039_v34 = vpack.c.bf16 %v1035_v31, %v1034_v33 }
 0x34a   : > { %1444 = vmatmul.mubr.msk.bf16.gmra.mxu1 %vm428_vm0, %v1039_v34 }
 0x3fb   : > { %v1441_v37 = vpop.f32.mrf.mxu1 }
 0x3fc   : > { %v1134_v41 = vadd.f32 %v1441_v37, %v1359_v36 }
 0x3fd   : > { %v1125_v42 = vpop.f32.mrf.mxu1 }
 0x3fe   : > { %v1166_v46 = vadd.f32 %v1158_v38, %v1134_v41  ;;  %v1126_v47 = vadd.f32 %v1359_v36, %v1125_v42 }
 0x3ff   : > { %v1442_v49 = vpop.f32.mrf.mxu1 }
 0x400   : > { %1174 = vst.msk [vmem:[%s1878_s21 + $0x10] sm:$0xff] %vm428_vm0, %v1166_v46  ;;  %v1164_v51 = vadd.f32 %v1156_v44, %v1126_v47  ;;  %v1137_v53 = vadd.f32 %v1442_v49, %v1359_v36 }
 0x401   : > { %v1128_v56 = vpop.f32.mrf.mxu1 }
 0x402   : > { %1172 = vst.msk [vmem:[%s1878_s21] sm:$0xff] %vm428_vm0, %v1164_v51  ;;  %v1167_v59 = vadd.f32 %v1159_v50, %v1137_v53  ;;  %v1129_v60 = vadd.f32 %v1359_v36, %v1128_v56 }
 0x404   : > { %1175 = vst.msk [vmem:[%s1878_s21 + $0x18] sm:$0xff] %vm428_vm0, %v1167_v59  ;;  %v1165_v61 = vadd.f32 %v1157_v57, %v1129_v60 }
 0x406   : > { %1173 = vst.msk [vmem:[%s1878_s21 + $0x8] sm:$0xff] %vm428_vm0, %v1165_v61 }
 0x40a   : > { %v1445_v63 = vpop.f32.mrf.mxu1 }
 0x40b   : > { %v1150_v10 = vadd.f32 %v1445_v63, %v1359_v36 }
 0x40c   : > { %v1141_v11 = vpop.f32.mrf.mxu1 }
 0x40d   : > { %v1170_v14 = vadd.f32 %v1162_v1, %v1150_v10  ;;  %v1142_v16 = vadd.f32 %v1359_v36, %v1141_v11 }
 0x40e   : > { %v1446_v18 = vpop.f32.mrf.mxu1 }
 0x40f   : > { %1178 = vst.msk [vmem:[%s1878_s21 + $0x30] sm:$0xff] %vm428_vm0, %v1170_v14  ;;  %v1168_v15 = vadd.f32 %v1160_v12, %v1142_v16  ;;  %v1153_v23 = vadd.f32 %v1446_v18, %v1359_v36 }
 0x410   : > { %v1144_v25 = vpop.f32.mrf.mxu1 }
 0x411   : > { %1176 = vst.msk [vmem:[%s1878_s21 + $0x20] sm:$0xff] %vm428_vm0, %v1168_v15  ;;  %v1171_v27 = vadd.f32 %v1163_v20, %v1153_v23  ;;  %v1145_v13 = vadd.f32 %v1359_v36, %v1144_v25 }
 0x413   : > { %1179 = vst.msk [vmem:[%s1878_s21 + $0x38] sm:$0xff] %vm428_vm0, %v1171_v27  ;;  %v1169_v28 = vadd.f32 %v1161_v17, %v1145_v13 }
 0x415   : > { %1177 = vst.msk [vmem:[%s1878_s21 + $0x28] sm:$0xff] %vm428_vm0, %v1169_v28 }
 0x416 PF: > { %s16_s23 = sadd.s32 1, %s1566_s23   ;;  %s1919_s21 = smov %s1562_s22 }
 0x417   : > { %p13_p5 = scmp.ge.s32.totalorder %s16_s23, 4   ;;  %s1920_s22 = smov %s1922_s24 }
 0x419   :  { %15 = sbr.rel (!%p13_p5) target bundleno = 2 (0x2), region = 91 }

</bundles_post_ra>
